<compile_context>
chip_gen: v7x
topology: tpu7x:2x2x1
jax: 0.10.0
libtpu: 0.0.40
codegen_flags: <defaults>
</compile_context>

<pallas_src>
import functools

import jax
import jax.numpy as jnp
from jax import lax
from jax.experimental import pallas as pl
from jax.experimental.pallas import tpu as pltpu

HIDDEN = 512   # hidden_width hard-coded in the module
LANES = 128    # TPU lane width


def _round_up(x, m):
    return (x + m - 1) // m * m


def _choose_batch_tile(batch):
    """Batch-tile heuristic.

    * B <= 256: one full-extent tile (block == full dim is always legal).
    * otherwise keep >= 2 grid steps so v7x can shard across its 2 TensorCores,
      and only grow the tile (512/1024) once there are >= 4 tiles of work so the
      per-grid-step overhead amortizes without starving megacore parallelism.
    """
    if batch <= 256:
        return batch
    for tb in (1024, 512):
        if batch >= 4 * tb:
            return tb
    return 256


def hiro_low_kernel(x_ref,
                    w1_ref, b1_ref,
                    w2_ref, b2_ref,
                    w3_ref, b3_ref,
                    wh_ref, bh_ref,
                    head_ref, feat_ref,
                    *, action_size):
    """One batch tile: bf16 MXU matmuls with f32 accumulation, fused heads."""
    # fc trunk: Linear -> ReLU, x3.  Weights/activations bf16, accumulate f32.
    h = jnp.dot(x_ref[...], w1_ref[...],
                preferred_element_type=jnp.float32) + b1_ref[...]
    h = jnp.maximum(h, 0.0)
    h = jnp.dot(h.astype(jnp.bfloat16), w2_ref[...],
                preferred_element_type=jnp.float32) + b2_ref[...]
    h = jnp.maximum(h, 0.0)
    h = jnp.dot(h.astype(jnp.bfloat16), w3_ref[...],
                preferred_element_type=jnp.float32) + b3_ref[...]
    h = jnp.maximum(h, 0.0)
    # features writeback in bf16 (halves the dominant HBM write stream).
    feat_ref[...] = h.astype(feat_ref.dtype)

    # Fused action + value heads: one lane-dense (tb, 128) matmul.
    raw = jnp.dot(h.astype(jnp.bfloat16), wh_ref[...],
                  preferred_element_type=jnp.float32) + bh_ref[...]
    lane = lax.broadcasted_iota(jnp.int32, raw.shape, 1)
    # tanh only on the first `action_size` lanes; lane `action_size` is the raw value.
    head_ref[...] = jnp.where(lane < action_size, jnp.tanh(raw), raw)


def prepare_params(params):
    """One-time prep: cast weights to bf16 and fuse wa/wv (+ biases) into a
    single 128-lane-padded head matrix."""
    A = params["wa"].shape[1]
    head_pad = _round_up(A + 1, LANES)

    wh = jnp.zeros((HIDDEN, head_pad), jnp.bfloat16)
    wh = wh.at[:, :A].set(params["wa"].astype(jnp.bfloat16))
    wh = wh.at[:, A:A + 1].set(params["wv"].astype(jnp.bfloat16))

    bh = jnp.zeros((1, head_pad), jnp.float32)
    bh = bh.at[:, :A].set(params["ba"].astype(jnp.float32))
    bh = bh.at[:, A:A + 1].set(params["bv"].astype(jnp.float32))

    return {
        "w1": params["w1"].astype(jnp.bfloat16), "b1": params["b1"].astype(jnp.float32),
        "w2": params["w2"].astype(jnp.bfloat16), "b2": params["b2"].astype(jnp.float32),
        "w3": params["w3"].astype(jnp.bfloat16), "b3": params["b3"].astype(jnp.float32),
        "wh": wh, "bh": bh,
    }


@functools.partial(jax.jit, static_argnames=("action_size",))
def hiro_low_forward(obs, prep, *, action_size):
    """obs: (B, obs_size + goal_size). Returns (goal_vector, value, features).
    goal_vector / value are f32; features are bf16."""
    obs = obs.astype(jnp.float32)                    # module does .float()
    B, in_dim = obs.shape
    head_pad = prep["wh"].shape[1]

    tb = _choose_batch_tile(B)
    grid = (pl.cdiv(B, tb),)                         # ragged last block allowed

    # bf16 input, lane width = in_dim (block last dim == full array dim).
    x = obs.astype(jnp.bfloat16)

    weight_spec = lambda shape: pl.BlockSpec(shape, lambda i: (0, 0))  # resident
    batch_spec = lambda cols: pl.BlockSpec((tb, cols), lambda i: (i, 0))

    head, feat = pl.pallas_call(
        functools.partial(hiro_low_kernel, action_size=action_size),
        out_shape=(
            jax.ShapeDtypeStruct((B, head_pad), jnp.float32),   # fused heads
            jax.ShapeDtypeStruct((B, HIDDEN), jnp.bfloat16),    # features (bf16)
        ),
        grid=grid,
        in_specs=[
            batch_spec(in_dim),                 # x
            weight_spec((in_dim, HIDDEN)),      # w1
            weight_spec((1, HIDDEN)),           # b1
            weight_spec((HIDDEN, HIDDEN)),      # w2
            weight_spec((1, HIDDEN)),           # b2
            weight_spec((HIDDEN, HIDDEN)),      # w3
            weight_spec((1, HIDDEN)),           # b3
            weight_spec((HIDDEN, head_pad)),    # wh (fused wa|wv, padded)
            weight_spec((1, head_pad)),         # bh
        ],
        out_specs=(
            batch_spec(head_pad),
            batch_spec(HIDDEN),
        ),
        compiler_params=pltpu.CompilerParams(
            dimension_semantics=("parallel",),      # v7x: shard batch tiles over 2 TCs
            vmem_limit_bytes=32 * 1024 * 1024,      # tb=1024 safe under v5e's 16 MiB default
        ),
    )(x,
      prep["w1"], prep["b1"],
      prep["w2"], prep["b2"],
      prep["w3"], prep["b3"],
      prep["wh"], prep["bh"])

    goal_vector = head[:, :action_size]
    value = head[:, action_size:action_size + 1]
    return goal_vector, value, feat


def init_params(key, in_dim, hidden, action_size):
    """Deterministic synthetic parameter init (weights stored as (in, out), f32)."""
    ks = jax.random.split(key, 10)
    s = lambda fan_in: 1.0 / jnp.sqrt(jnp.float32(fan_in))
    return {
        "w1": jax.random.normal(ks[0], (in_dim, hidden), jnp.float32) * s(in_dim),
        "b1": jax.random.normal(ks[1], (1, hidden), jnp.float32) * 0.01,
        "w2": jax.random.normal(ks[2], (hidden, hidden), jnp.float32) * s(hidden),
        "b2": jax.random.normal(ks[3], (1, hidden), jnp.float32) * 0.01,
        "w3": jax.random.normal(ks[4], (hidden, hidden), jnp.float32) * s(hidden),
        "b3": jax.random.normal(ks[5], (1, hidden), jnp.float32) * 0.01,
        "wa": jax.random.normal(ks[6], (hidden, action_size), jnp.float32) * s(hidden),
        "ba": jax.random.normal(ks[7], (1, action_size), jnp.float32) * 0.01,
        "wv": jax.random.normal(ks[8], (hidden, 1), jnp.float32) * s(hidden),
        "bv": jax.random.normal(ks[9], (1, 1), jnp.float32) * 0.01,
    }


def reference_forward(obs, p):
    """Pure-JAX reference using the SAME bf16-input / f32-accumulate math."""
    def mm(a, w):
        return jnp.dot(a.astype(jnp.bfloat16), w.astype(jnp.bfloat16),
                       preferred_element_type=jnp.float32)
    h = jnp.maximum(mm(obs, p["w1"]) + p["b1"], 0.0)
    h = jnp.maximum(mm(h, p["w2"]) + p["b2"], 0.0)
    h = jnp.maximum(mm(h, p["w3"]) + p["b3"], 0.0)
    act = jnp.tanh(mm(h, p["wa"]) + p["ba"])
    val = mm(h, p["wv"]) + p["bv"]
    return act, val, h


if __name__ == "__main__":
    # Small shapes consistent with the module: obs_size=27, goal_size=5 -> 32 inputs.
    obs_size = 27
    goal_size = 5
    action_size = 4
    in_dim = obs_size + goal_size

    key = jax.random.PRNGKey(0)
    k_obs_small, k_obs_big, k_par = jax.random.split(key, 3)
    params = init_params(k_par, in_dim, HIDDEN, action_size)
    prep = prepare_params(params)

    # Exercise both the single-tile (B=8) and multi-tile ragged (B=300) paths.
    for B, k in ((8, k_obs_small), (300, k_obs_big)):
        obs = jax.random.normal(k, (B, in_dim), jnp.float32)
        goal_vector, value, features = hiro_low_forward(obs, prep,
                                                        action_size=action_size)
        jax.block_until_ready((goal_vector, value, features))

        ref_act, ref_val, ref_feat = reference_forward(obs, params)
        assert goal_vector.shape == (B, action_size)
        assert value.shape == (B, 1)
        assert features.shape == (B, HIDDEN)
        assert jnp.allclose(goal_vector, ref_act, atol=5e-3, rtol=5e-3)
        assert jnp.allclose(value, ref_val, atol=5e-3, rtol=5e-3)
        # features are emitted in bf16 -> slightly looser tolerance.
        assert jnp.allclose(features.astype(jnp.float32), ref_feat,
                            atol=1e-2, rtol=1e-2)

    print("KERNEL_OK")
</pallas_src>

<mosaic_0001>
module attributes {stable_mosaic.version = 11 : i64} {
  func.func @hiro_low_kernel(%arg0: i32, %arg1: memref<8x32xbf16, #tpu.memory_space<vmem>>, %arg2: memref<32x512xbf16, #tpu.memory_space<vmem>>, %arg3: memref<1x512xf32, #tpu.memory_space<vmem>>, %arg4: memref<512x512xbf16, #tpu.memory_space<vmem>>, %arg5: memref<1x512xf32, #tpu.memory_space<vmem>>, %arg6: memref<512x512xbf16, #tpu.memory_space<vmem>>, %arg7: memref<1x512xf32, #tpu.memory_space<vmem>>, %arg8: memref<512x128xbf16, #tpu.memory_space<vmem>>, %arg9: memref<1x128xf32, #tpu.memory_space<vmem>>, %arg10: memref<8x128xf32, #tpu.memory_space<vmem>>, %arg11: memref<8x512xbf16, #tpu.memory_space<vmem>>) attributes {dimension_semantics = [#tpu.dimension_semantics<parallel>], iteration_bounds = array<i64: 1>, scalar_prefetch = 0 : i64, scratch_operands = 0 : i64, tpu.core_type = #tpu.core_type<tc>, window_params = [{transform_indices = @transform_0, window_bounds = array<i64: 8, 32>}, {pipeline_mode = #tpu.pipeline_mode<synchronous>, transform_indices = @transform_1, window_bounds = array<i64: 32, 512>}, {pipeline_mode = #tpu.pipeline_mode<synchronous>, transform_indices = @transform_2, window_bounds = array<i64: 1, 512>}, {pipeline_mode = #tpu.pipeline_mode<synchronous>, transform_indices = @transform_3, window_bounds = array<i64: 512, 512>}, {pipeline_mode = #tpu.pipeline_mode<synchronous>, transform_indices = @transform_4, window_bounds = array<i64: 1, 512>}, {pipeline_mode = #tpu.pipeline_mode<synchronous>, transform_indices = @transform_5, window_bounds = array<i64: 512, 512>}, {pipeline_mode = #tpu.pipeline_mode<synchronous>, transform_indices = @transform_6, window_bounds = array<i64: 1, 512>}, {pipeline_mode = #tpu.pipeline_mode<synchronous>, transform_indices = @transform_7, window_bounds = array<i64: 512, 128>}, {pipeline_mode = #tpu.pipeline_mode<synchronous>, transform_indices = @transform_8, window_bounds = array<i64: 1, 128>}, {transform_indices = @transform_9, window_bounds = array<i64: 8, 128>}, {transform_indices = @transform_10, window_bounds = array<i64: 8, 512>}]} {
    %c0 = arith.constant 0 : index
    %c0_0 = arith.constant 0 : index
    %0 = vector.load %arg1[%c0, %c0_0] : memref<8x32xbf16, #tpu.memory_space<vmem>>, vector<8x32xbf16>
    %c0_1 = arith.constant 0 : index
    %c0_2 = arith.constant 0 : index
    %1 = vector.load %arg2[%c0_1, %c0_2] : memref<32x512xbf16, #tpu.memory_space<vmem>>, vector<32x512xbf16>
    %cst = arith.constant dense<0.000000e+00> : vector<8x512xf32>
    %2 = tpu.matmul %0, %1, %cst {dimension_numbers = #tpu.dot_dimension_numbers<[1], [0], [0], [1], [0, 0, 1, 1], [], []>} : vector<8x32xbf16>, vector<32x512xbf16>, vector<8x512xf32> -> vector<8x512xf32>
    %c0_3 = arith.constant 0 : index
    %c0_4 = arith.constant 0 : index
    %3 = vector.load %arg3[%c0_3, %c0_4] : memref<1x512xf32, #tpu.memory_space<vmem>>, vector<1x512xf32>
    %4 = vector.broadcast %3 : vector<1x512xf32> to vector<8x512xf32>
    %5 = arith.addf %2, %4 : vector<8x512xf32>
    %cst_5 = arith.constant 0.000000e+00 : f32
    %6 = vector.broadcast %cst_5 : f32 to vector<8x512xf32>
    %7 = arith.maximumf %5, %6 : vector<8x512xf32>
    %8 = arith.truncf %7 : vector<8x512xf32> to vector<8x512xbf16>
    %c0_6 = arith.constant 0 : index
    %c0_7 = arith.constant 0 : index
    %9 = vector.load %arg4[%c0_6, %c0_7] : memref<512x512xbf16, #tpu.memory_space<vmem>>, vector<512x512xbf16>
    %cst_8 = arith.constant dense<0.000000e+00> : vector<8x512xf32>
    %10 = tpu.matmul %8, %9, %cst_8 {dimension_numbers = #tpu.dot_dimension_numbers<[1], [0], [0], [1], [0, 0, 1, 1], [], []>} : vector<8x512xbf16>, vector<512x512xbf16>, vector<8x512xf32> -> vector<8x512xf32>
    %c0_9 = arith.constant 0 : index
    %c0_10 = arith.constant 0 : index
    %11 = vector.load %arg5[%c0_9, %c0_10] : memref<1x512xf32, #tpu.memory_space<vmem>>, vector<1x512xf32>
    %12 = vector.broadcast %11 : vector<1x512xf32> to vector<8x512xf32>
    %13 = arith.addf %10, %12 : vector<8x512xf32>
    %cst_11 = arith.constant 0.000000e+00 : f32
    %14 = vector.broadcast %cst_11 : f32 to vector<8x512xf32>
    %15 = arith.maximumf %13, %14 : vector<8x512xf32>
    %16 = arith.truncf %15 : vector<8x512xf32> to vector<8x512xbf16>
    %c0_12 = arith.constant 0 : index
    %c0_13 = arith.constant 0 : index
    %17 = vector.load %arg6[%c0_12, %c0_13] : memref<512x512xbf16, #tpu.memory_space<vmem>>, vector<512x512xbf16>
    %cst_14 = arith.constant dense<0.000000e+00> : vector<8x512xf32>
    %18 = tpu.matmul %16, %17, %cst_14 {dimension_numbers = #tpu.dot_dimension_numbers<[1], [0], [0], [1], [0, 0, 1, 1], [], []>} : vector<8x512xbf16>, vector<512x512xbf16>, vector<8x512xf32> -> vector<8x512xf32>
    %c0_15 = arith.constant 0 : index
    %c0_16 = arith.constant 0 : index
    %19 = vector.load %arg7[%c0_15, %c0_16] : memref<1x512xf32, #tpu.memory_space<vmem>>, vector<1x512xf32>
    %20 = vector.broadcast %19 : vector<1x512xf32> to vector<8x512xf32>
    %21 = arith.addf %18, %20 : vector<8x512xf32>
    %cst_17 = arith.constant 0.000000e+00 : f32
    %22 = vector.broadcast %cst_17 : f32 to vector<8x512xf32>
    %23 = arith.maximumf %21, %22 : vector<8x512xf32>
    %24 = arith.truncf %23 : vector<8x512xf32> to vector<8x512xbf16>
    %c0_18 = arith.constant 0 : index
    %c0_19 = arith.constant 0 : index
    %25 = vector.load %arg11[%c0_18, %c0_19] : memref<8x512xbf16, #tpu.memory_space<vmem>>, vector<8x512xbf16>
    tpu.vector_store %arg11[%c0_18, %c0_19], %24 {strides = array<i32>} : memref<8x512xbf16, #tpu.memory_space<vmem>>, vector<8x512xbf16>,
    %26 = arith.truncf %23 : vector<8x512xf32> to vector<8x512xbf16>
    %c0_20 = arith.constant 0 : index
    %c0_21 = arith.constant 0 : index
    %27 = vector.load %arg8[%c0_20, %c0_21] : memref<512x128xbf16, #tpu.memory_space<vmem>>, vector<512x128xbf16>
    %cst_22 = arith.constant dense<0.000000e+00> : vector<8x128xf32>
    %28 = tpu.matmul %26, %27, %cst_22 {dimension_numbers = #tpu.dot_dimension_numbers<[1], [0], [0], [1], [0, 0, 1, 1], [], []>} : vector<8x512xbf16>, vector<512x128xbf16>, vector<8x128xf32> -> vector<8x128xf32>
    %c0_23 = arith.constant 0 : index
    %c0_24 = arith.constant 0 : index
    %29 = vector.load %arg9[%c0_23, %c0_24] : memref<1x128xf32, #tpu.memory_space<vmem>>, vector<1x128xf32>
    %30 = vector.broadcast %29 : vector<1x128xf32> to vector<8x128xf32>
    %31 = arith.addf %28, %30 : vector<8x128xf32>
    %32 = tpu.iota {dimensions = array<i32: 1>} : vector<8x128xi32>
    %c4_i32 = arith.constant 4 : i32
    %33 = vector.broadcast %c4_i32 : i32 to vector<8x128xi32>
    %34 = arith.cmpi slt, %32, %33 : vector<8x128xi32>
    %35 = math.tanh %31 : vector<8x128xf32>
    %36 = arith.select %34, %35, %31 : vector<8x128xi1>, vector<8x128xf32>
    %c0_25 = arith.constant 0 : index
    %c0_26 = arith.constant 0 : index
    %37 = vector.load %arg10[%c0_25, %c0_26] : memref<8x128xf32, #tpu.memory_space<vmem>>, vector<8x128xf32>
    tpu.vector_store %arg10[%c0_25, %c0_26], %36 {strides = array<i32>} : memref<8x128xf32, #tpu.memory_space<vmem>>, vector<8x128xf32>,
    return
  }
  func.func @transform_0(%arg0: i32) -> (i32, i32) {
    %c0_i32 = arith.constant 0 : i32
    %c0_i32_0 = arith.constant 0 : i32
    return %arg0, %c0_i32 : i32, i32
  }
  func.func @transform_1(%arg0: i32) -> (i32, i32) {
    %c0_i32 = arith.constant 0 : i32
    %c0_i32_0 = arith.constant 0 : i32
    %c0_i32_1 = arith.constant 0 : i32
    return %c0_i32, %c0_i32_0 : i32, i32
  }
  func.func @transform_2(%arg0: i32) -> (i32, i32) {
    %c0_i32 = arith.constant 0 : i32
    %c0_i32_0 = arith.constant 0 : i32
    %c0_i32_1 = arith.constant 0 : i32
    return %c0_i32, %c0_i32_0 : i32, i32
  }
  func.func @transform_3(%arg0: i32) -> (i32, i32) {
    %c0_i32 = arith.constant 0 : i32
    %c0_i32_0 = arith.constant 0 : i32
    %c0_i32_1 = arith.constant 0 : i32
    return %c0_i32, %c0_i32_0 : i32, i32
  }
  func.func @transform_4(%arg0: i32) -> (i32, i32) {
    %c0_i32 = arith.constant 0 : i32
    %c0_i32_0 = arith.constant 0 : i32
    %c0_i32_1 = arith.constant 0 : i32
    return %c0_i32, %c0_i32_0 : i32, i32
  }
  func.func @transform_5(%arg0: i32) -> (i32, i32) {
    %c0_i32 = arith.constant 0 : i32
    %c0_i32_0 = arith.constant 0 : i32
    %c0_i32_1 = arith.constant 0 : i32
    return %c0_i32, %c0_i32_0 : i32, i32
  }
  func.func @transform_6(%arg0: i32) -> (i32, i32) {
    %c0_i32 = arith.constant 0 : i32
    %c0_i32_0 = arith.constant 0 : i32
    %c0_i32_1 = arith.constant 0 : i32
    return %c0_i32, %c0_i32_0 : i32, i32
  }
  func.func @transform_7(%arg0: i32) -> (i32, i32) {
    %c0_i32 = arith.constant 0 : i32
    %c0_i32_0 = arith.constant 0 : i32
    %c0_i32_1 = arith.constant 0 : i32
    return %c0_i32, %c0_i32_0 : i32, i32
  }
  func.func @transform_8(%arg0: i32) -> (i32, i32) {
    %c0_i32 = arith.constant 0 : i32
    %c0_i32_0 = arith.constant 0 : i32
    %c0_i32_1 = arith.constant 0 : i32
    return %c0_i32, %c0_i32_0 : i32, i32
  }
  func.func @transform_9(%arg0: i32) -> (i32, i32) {
    %c0_i32 = arith.constant 0 : i32
    %c0_i32_0 = arith.constant 0 : i32
    return %arg0, %c0_i32 : i32, i32
  }
  func.func @transform_10(%arg0: i32) -> (i32, i32) {
    %c0_i32 = arith.constant 0 : i32
    %c0_i32_0 = arith.constant 0 : i32
    return %arg0, %c0_i32 : i32, i32
  }
}

</mosaic_0001>

<bundles_post_ra>
// kernel: hiro_low_forward.1
= control target key start
LH: loop header
LB: loop body
LE: loop exit
PB: predicated region body
PF: predicated region fallthrough
CT: control target
= control target key end

     0   :  { %16 = vsyncpa [#allocation3], 0  ;;  %s3705_s0 = inlined_call_operand.vmem [shape: bf16[8,32], index: 0, kind: input, shape index: {}]   ;;  %s3706_s1 = inlined_call_operand.hbm [shape: bf16[32,512], index: 1, kind: input, shape index: {}]   ;;  %s3707_s2 = inlined_call_operand.vmem [shape: f32[1,512], index: 2, kind: input, shape index: {}]   ;;  %s3708_s3 = inlined_call_operand.hbm [shape: bf16[512,512], index: 3, kind: input, shape index: {}]   ;;  %s3709_s4 = inlined_call_operand.vmem [shape: f32[1,512], index: 4, kind: input, shape index: {}]   ;;  %s3710_s5 = inlined_call_operand.hbm [shape: bf16[512,512], index: 5, kind: input, shape index: {}]   ;;  %s3711_s6 = inlined_call_operand.vmem [shape: f32[1,512], index: 6, kind: input, shape index: {}]   ;;  %s3712_s7 = inlined_call_operand.hbm [shape: bf16[512,128], index: 7, kind: input, shape index: {}]   ;;  %s3713_s8 = inlined_call_operand.vmem [shape: f32[1,128], index: 8, kind: input, shape index: {}]   ;;  %s3714_s9 = inlined_call_operand.vmem [shape: f32[8,128], index: 9, kind: output, shape index: {0}]   ;;  %s3715_s10 = inlined_call_operand.hbm [shape: bf16[8,512], index: 10, kind: output, shape index: {1}]  }
   0x1   :  { %17 = vsyncpa [#allocation6], 0 }
   0x2   :  { %18 = vsyncpa [#allocation9], 0 }
   0x3   :  { %19 = vsyncpa [#allocation4], 0  ;;  %s3493_s13 = smov [#allocation5]   ;;  %s3494_s15 = smov [#allocation2]  }
   0x4   :  { %s41_s14 = sshll.u32 %s3493_s13, 4  ;;  %s27_s16 = sshll.u32 %s3494_s15, 4  ;;  %s42_s14 = int_to_ptr.vmem [resolvable:$true] %s41_s14  ;;  %s3558_s16 = int_to_ptr.vmem [resolvable:$true] %s27_s16 }
   0x5   :  { %s3375_s19 = scalar_lea.hbm %s3708_s3, 16384 }
   0x6   :  { %p3376_p0 = scmp.ne.s32.totalorder %s3708_s3, %s3375_s19  ;;  %p3379_p1 = scmp.lt.u32.totalorder %s3375_s19, %s3708_s3 }
   0x8   :  { %p3381_p2 = pnand %p3379_p1, %p3376_p0 }
   0xa   :  { %3384 = shalt.err (!%p3381_p2)
}
   0xb   :  { %s3385_s24 = scalar_lea.vmem %s42_s14, 16384  ;;  %p3390_p4 = scmp.lt.s32.totalorder %s42_s14, %s42_s14 }
   0xc   :  { %p3386_p3 = scmp.ne.s32.totalorder %s42_s14, %s3385_s24  ;;  %p3391_p5 = scmp.lt.s32.totalorder %s3385_s24, %s3385_s24 }
   0xe   :  { %p3392_p6 = por %p3391_p5, %p3390_p4 }
  0x10   :  { %p3393_p7 = pnand %p3392_p6, %p3386_p3 }
  0x12   :  { %3396 = shalt.err (!%p3393_p7)
}
  0x13   :  { %s3495_s25 = smov 256   ;;  %s3496_s26 = smov 16  }
  0x14   :  { %47 = dma.hbm_to_vmem [thread:$0]  %s3708_s3, 16384, %s42_s14, [#allocation6], %s3495_s25, %s3495_s25, %s3496_s26  }
  0x15   :  { %s3397_s11 = scalar_lea.hbm %s3706_s1, 1024 }
  0x16   :  { %p3398_p8 = scmp.ne.s32.totalorder %s3706_s1, %s3397_s11  ;;  %p3401_p9 = scmp.lt.u32.totalorder %s3397_s11, %s3706_s1 }
  0x18   :  { %p3403_p10 = pnand %p3401_p9, %p3398_p8 }
  0x1a   :  { %3406 = shalt.err (!%p3403_p10)
}
  0x1b   :  { %s3407_s18 = scalar_lea.vmem %s3558_s16, 1024  ;;  %p3412_p12 = scmp.lt.s32.totalorder %s3558_s16, %s3558_s16 }
  0x1c   :  { %p3408_p11 = scmp.ne.s32.totalorder %s3558_s16, %s3407_s18  ;;  %p3413_p13 = scmp.lt.s32.totalorder %s3407_s18, %s3407_s18 }
  0x1e   :  { %p3414_p0 = por %p3413_p13, %p3412_p12 }
  0x20   :  { %p3415_p1 = pnand %p3414_p0, %p3408_p11 }
  0x22   :  { %3418 = shalt.err (!%p3415_p1)
}
  0x23   :  { %33 = dma.hbm_to_vmem [thread:$0]  %s3706_s1, 1024, %s3558_s16, [#allocation3], %s3495_s25, %s3495_s25, %s3496_s26  }
  0x24   :  { %s3497_s19 = smov [#allocation7]   ;;  %s3498_s21 = smov [#allocation8]  }
  0x25   :  { %s55_s20 = sshll.u32 %s3497_s19, 4  ;;  %s69_s22 = sshll.u32 %s3498_s21, 4  ;;  %s56_s20 = int_to_ptr.vmem [resolvable:$true] %s55_s20  ;;  %s3595_s22 = int_to_ptr.vmem [resolvable:$true] %s69_s22 }
  0x26   :  { %s3419_s27 = scalar_lea.hbm %s3710_s5, 16384 }
  0x27   :  { %p3420_p2 = scmp.ne.s32.totalorder %s3710_s5, %s3419_s27  ;;  %p3423_p3 = scmp.lt.u32.totalorder %s3419_s27, %s3710_s5 }
  0x29   :  { %p3425_p4 = pnand %p3423_p3, %p3420_p2 }
  0x2b   :  { %3428 = shalt.err (!%p3425_p4)
}
  0x2c   :  { %s3429_s1 = scalar_lea.vmem %s56_s20, 16384  ;;  %p3434_p6 = scmp.lt.s32.totalorder %s56_s20, %s56_s20 }
  0x2d   :  { %p3430_p5 = scmp.ne.s32.totalorder %s56_s20, %s3429_s1  ;;  %p3435_p7 = scmp.lt.s32.totalorder %s3429_s1, %s3429_s1 }
  0x2f   :  { %p3436_p8 = por %p3435_p7, %p3434_p6 }
  0x31   :  { %p3437_p9 = pnand %p3436_p8, %p3430_p5 }
  0x33   :  { %3440 = shalt.err (!%p3437_p9)
}
  0x34   :  { %61 = dma.hbm_to_vmem [thread:$0]  %s3710_s5, 16384, %s56_s20, [#allocation6], %s3495_s25, %s3495_s25, %s3496_s26  }
  0x35   :  { %s3441_s17 = scalar_lea.hbm %s3712_s7, 4096 }
  0x36   :  { %p3442_p10 = scmp.ne.s32.totalorder %s3712_s7, %s3441_s17  ;;  %p3445_p11 = scmp.lt.u32.totalorder %s3441_s17, %s3712_s7 }
  0x38   :  { %p3447_p12 = pnand %p3445_p11, %p3442_p10 }
  0x3a   :  { %3450 = shalt.err (!%p3447_p12)
}
  0x3b   :  { %s3451_s21 = scalar_lea.vmem %s3595_s22, 4096  ;;  %p3456_p0 = scmp.lt.s32.totalorder %s3595_s22, %s3595_s22 }
  0x3c   :  { %p3452_p13 = scmp.ne.s32.totalorder %s3595_s22, %s3451_s21  ;;  %p3457_p1 = scmp.lt.s32.totalorder %s3451_s21, %s3451_s21 }
  0x3e   :  { %p3458_p2 = por %p3457_p1, %p3456_p0 }
  0x40   :  { %p3459_p3 = pnand %p3458_p2, %p3452_p13 }
  0x42   :  { %3462 = shalt.err (!%p3459_p3)
}
  0x43   :  { %s3499_s5 = smov 64   ;;  %s3500_s25 = smov 4  }
  0x44   :  { %75 = dma.hbm_to_vmem [thread:$0]  %s3712_s7, 4096, %s3595_s22, [#allocation9], %s3499_s5, %s3499_s5, %s3500_s25  }
  0x45   :  { %3485 = dma.done.wait [#allocation3], 1024  }
  0x46   :  { %3486 = vsyncadd [#allocation3], 4294966272 }
  0x47   :  { %3487 = dma.done.wait [#allocation6], 32768  }
  0x48   :  { %3488 = vsyncadd [#allocation6], 4294934528 }
  0x49   :  { %3489 = dma.done.wait [#allocation9], 4096  }
  0x4a   :  { %3490 = vsyncadd [#allocation9], 4294963200  ;;  %v3501_v0 = vmov 0   ;;  %v2945_v1 = vld [vmem:[#allocation2 + $0x4] ss:$16 sps:$4 sm:$0xff]   ;;  %vm162_vm0 = vcmask 261120  }
  0x4b   :  { %198 = vmatprep.mubr.bf16.mxu0 %v3501_v0  ;;  %239 = vmatprep.mubr.bf16.mxu1 %v3501_v0  ;;  %v2947_v2 = vld [vmem:[#allocation2] ss:$16 sps:$4 sm:$0xff]   ;;  %v2948_v3 = vld [vmem:[#allocation2 + $0x24] ss:$16 sps:$4 sm:$0xff]   ;;  %v2951_v5 = vld [vmem:[#allocation2 + $0xc] ss:$16 sps:$4 sm:$0xff]  }
  0x4c   :  { %166 = vmatprep.subr.bf16.mxu0 %v2945_v1  ;;  %v2950_v4 = vld [vmem:[#allocation2 + $0x20] ss:$16 sps:$4 sm:$0xff]   ;;  %v2953_v6 = vld [vmem:[#allocation2 + $0x8] ss:$16 sps:$4 sm:$0xff]   ;;  %207 = vmatprep.subr.bf16.mxu1 %v2951_v5  ;;  %v2954_v8 = vld [vmem:[#allocation2 + $0x2c] ss:$16 sps:$4 sm:$0xff]  }
  0x4d   :  { %167 = vmatpush1.bf16.msra.mxu0 %v2947_v2  ;;  %v91_v7 = vld [vmem:[%s3705_s0] sm:$0xf]  ;;  %208 = vmatpush1.bf16.msra.mxu1 %v2953_v6  ;;  %v2956_v9 = vld [vmem:[#allocation2 + $0x28] ss:$16 sps:$4 sm:$0xff]   ;;  %v2959_v10 = vld [vmem:[#allocation5 + $0x4] ss:$16 sps:$4 sm:$0xff]  }
  0x4e   :  { %168 = vmatprep.subr.bf16.mxu0 %v2948_v3  ;;  %209 = vmatprep.subr.bf16.mxu1 %v2954_v8  ;;  %v2957_v11 = vld [vmem:[#allocation5] ss:$16 sps:$4 sm:$0xff]   ;;  %v2962_v12 = vld [vmem:[#allocation5 + $0xc] ss:$16 sps:$4 sm:$0xff]   ;;  %v2965_v13 = vld [vmem:[#allocation5 + $0x24] ss:$16 sps:$4 sm:$0xff]  }
  0x4f   :  { %v2960_v14 = vld [vmem:[#allocation5 + $0x8] ss:$16 sps:$4 sm:$0xff]   ;;  %v2963_v15 = vld [vmem:[#allocation5 + $0x20] ss:$16 sps:$4 sm:$0xff]   ;;  %v2968_v16 = vld [vmem:[#allocation5 + $0x2c] ss:$16 sps:$4 sm:$0xff]  }
  0x50   :  { %v2971_v17 = vld [vmem:[#allocation5 + $0x44] ss:$16 sps:$4 sm:$0xff]   ;;  %v2966_v18 = vld [vmem:[#allocation5 + $0x28] ss:$16 sps:$4 sm:$0xff]   ;;  %v2969_v19 = vld [vmem:[#allocation5 + $0x40] ss:$16 sps:$4 sm:$0xff]  }
  0x51   :  { %169 = vmatpush1.bf16.msra.mxu0 %v2950_v4  ;;  %210 = vmatpush1.bf16.msra.mxu1 %v2956_v9  ;;  %v2974_v20 = vld [vmem:[#allocation5 + $0x4c] ss:$16 sps:$4 sm:$0xff]   ;;  %v2977_v21 = vld [vmem:[#allocation5 + $0x64] ss:$16 sps:$4 sm:$0xff]   ;;  %v2972_v22 = vld [vmem:[#allocation5 + $0x48] ss:$16 sps:$4 sm:$0xff]  }
  0x52   :  { %1046 = vmatprep.subr.bf16.mxu0 %v2959_v10  ;;  %1128 = vmatprep.subr.bf16.mxu1 %v2962_v12  ;;  %v2975_v23 = vld [vmem:[#allocation5 + $0x60] ss:$16 sps:$4 sm:$0xff]   ;;  %v2980_v24 = vld [vmem:[#allocation5 + $0x6c] ss:$16 sps:$4 sm:$0xff]   ;;  %v2983_v25 = vld [vmem:[#allocation5 + $0x84] ss:$16 sps:$4 sm:$0xff]   ;;  %v102_v12 = vlaneseq }
  0x53   :  { %v2978_v26 = vld [vmem:[#allocation5 + $0x68] ss:$16 sps:$4 sm:$0xff]   ;;  %v2981_v27 = vld [vmem:[#allocation5 + $0x80] ss:$16 sps:$4 sm:$0xff]   ;;  %v2986_v28 = vld [vmem:[#allocation5 + $0x8c] ss:$16 sps:$4 sm:$0xff]  }
  0x54   :  { %2572 = vmatmul.mubr.msk.bf16.vlgmr.msra.gmra.mrb[0].mxu0 %vm162_vm0, %v91_v7  ;;  %2573 = vmatmul.mubr.msk.bf16.vlgmr.msra.gmra.mrb[0].mxu1 %vm162_vm0, %v91_v7  ;;  %v2989_v29 = vld [vmem:[#allocation5 + $0xa4] ss:$16 sps:$4 sm:$0xff]   ;;  %v2984_v30 = vld [vmem:[#allocation5 + $0x88] ss:$16 sps:$4 sm:$0xff]   ;;  %v2987_v31 = vld [vmem:[#allocation5 + $0xa0] ss:$16 sps:$4 sm:$0xff]  }
  0x55   :  { %1047 = vmatpush1.bf16.msra.mxu0 %v2957_v11  ;;  %1129 = vmatpush1.bf16.msra.mxu1 %v2960_v14  ;;  %v2992_v32 = vld [vmem:[#allocation5 + $0xac] ss:$16 sps:$4 sm:$0xff]   ;;  %v2995_v33 = vld [vmem:[#allocation5 + $0xc4] ss:$16 sps:$4 sm:$0xff]   ;;  %v2990_v34 = vld [vmem:[#allocation5 + $0xa8] ss:$16 sps:$4 sm:$0xff]  }
  0x56   :  { %1048 = vmatprep.subr.bf16.mxu0 %v2965_v13  ;;  %1130 = vmatprep.subr.bf16.mxu1 %v2968_v16  ;;  %v2993_v35 = vld [vmem:[#allocation5 + $0xc0] ss:$16 sps:$4 sm:$0xff]   ;;  %v2998_v36 = vld [vmem:[#allocation5 + $0xcc] ss:$16 sps:$4 sm:$0xff]   ;;  %v3001_v37 = vld [vmem:[#allocation5 + $0xe4] ss:$16 sps:$4 sm:$0xff]  }
  0x57   :  { %v2996_v38 = vld [vmem:[#allocation5 + $0xc8] ss:$16 sps:$4 sm:$0xff]   ;;  %v2999_v39 = vld [vmem:[#allocation5 + $0xe0] ss:$16 sps:$4 sm:$0xff]   ;;  %v3004_v40 = vld [vmem:[#allocation5 + $0xec] ss:$16 sps:$4 sm:$0xff]  }
  0x58   :  { %v3007_v41 = vld [vmem:[#allocation5 + $0x104] ss:$16 sps:$4 sm:$0xff]   ;;  %v3002_v42 = vld [vmem:[#allocation5 + $0xe8] ss:$16 sps:$4 sm:$0xff]   ;;  %v3005_v43 = vld [vmem:[#allocation5 + $0x100] ss:$16 sps:$4 sm:$0xff]  }
  0x59   :  { %1049 = vmatpush1.bf16.msra.mxu0 %v2963_v15  ;;  %1131 = vmatpush1.bf16.msra.mxu1 %v2966_v18  ;;  %v3010_v44 = vld [vmem:[#allocation5 + $0x10c] ss:$16 sps:$4 sm:$0xff]   ;;  %v3013_v45 = vld [vmem:[#allocation5 + $0x124] ss:$16 sps:$4 sm:$0xff]   ;;  %v3008_v46 = vld [vmem:[#allocation5 + $0x108] ss:$16 sps:$4 sm:$0xff]  }
  0x5a   :  { %1050 = vmatprep.subr.bf16.mxu0 %v2971_v17  ;;  %1132 = vmatprep.subr.bf16.mxu1 %v2974_v20  ;;  %v3011_v47 = vld [vmem:[#allocation5 + $0x120] ss:$16 sps:$4 sm:$0xff]   ;;  %v3016_v48 = vld [vmem:[#allocation5 + $0x12c] ss:$16 sps:$4 sm:$0xff]   ;;  %v3019_v49 = vld [vmem:[#allocation5 + $0x144] ss:$16 sps:$4 sm:$0xff]  }
  0x5b   :  { %v3014_v50 = vld [vmem:[#allocation5 + $0x128] ss:$16 sps:$4 sm:$0xff]   ;;  %v3017_v51 = vld [vmem:[#allocation5 + $0x140] ss:$16 sps:$4 sm:$0xff]   ;;  %v3022_v52 = vld [vmem:[#allocation5 + $0x14c] ss:$16 sps:$4 sm:$0xff]  }
  0x5c   :  { %v3025_v53 = vld [vmem:[#allocation5 + $0x164] ss:$16 sps:$4 sm:$0xff]   ;;  %v3020_v54 = vld [vmem:[#allocation5 + $0x148] ss:$16 sps:$4 sm:$0xff]   ;;  %v3023_v55 = vld [vmem:[#allocation5 + $0x160] ss:$16 sps:$4 sm:$0xff]  }
  0x5d   :  { %1051 = vmatpush1.bf16.msra.mxu0 %v2969_v19  ;;  %1133 = vmatpush1.bf16.msra.mxu1 %v2972_v22  ;;  %v3028_v56 = vld [vmem:[#allocation5 + $0x16c] ss:$16 sps:$4 sm:$0xff]   ;;  %v3031_v57 = vld [vmem:[#allocation5 + $0x184] ss:$16 sps:$4 sm:$0xff]   ;;  %v3026_v58 = vld [vmem:[#allocation5 + $0x168] ss:$16 sps:$4 sm:$0xff]  }
  0x5e   :  { %1052 = vmatprep.subr.bf16.mxu0 %v2977_v21  ;;  %1134 = vmatprep.subr.bf16.mxu1 %v2980_v24  ;;  %v3029_v59 = vld [vmem:[#allocation5 + $0x180] ss:$16 sps:$4 sm:$0xff]   ;;  %v3034_v60 = vld [vmem:[#allocation5 + $0x18c] ss:$16 sps:$4 sm:$0xff]   ;;  %v3037_v61 = vld [vmem:[#allocation5 + $0x1a4] ss:$16 sps:$4 sm:$0xff]  }
  0x5f   :  { %v3032_v62 = vld [vmem:[#allocation5 + $0x188] ss:$16 sps:$4 sm:$0xff]   ;;  %v3035_v63 = vld [vmem:[#allocation5 + $0x1a0] ss:$16 sps:$4 sm:$0xff]   ;;  %v3040_v0 = vld [vmem:[#allocation5 + $0x1ac] ss:$16 sps:$4 sm:$0xff]  }
  0x60   :  { %v3038_v1 = vld [vmem:[#allocation5 + $0x1a8] ss:$16 sps:$4 sm:$0xff]   ;;  %v3043_v2 = vld [vmem:[#allocation5 + $0x1c4] ss:$16 sps:$4 sm:$0xff]   ;;  %v3046_v3 = vld [vmem:[#allocation5 + $0x1cc] ss:$16 sps:$4 sm:$0xff]  }
  0x61   :  { %1053 = vmatpush1.bf16.msra.mxu0 %v2975_v23  ;;  %1135 = vmatpush1.bf16.msra.mxu1 %v2978_v26  ;;  %v3041_v4 = vld [vmem:[#allocation5 + $0x1c0] ss:$16 sps:$4 sm:$0xff]   ;;  %v3044_v5 = vld [vmem:[#allocation5 + $0x1c8] ss:$16 sps:$4 sm:$0xff]   ;;  %v3049_v6 = vld [vmem:[#allocation5 + $0x1e4] ss:$16 sps:$4 sm:$0xff]  }
  0x62   :  { %1054 = vmatprep.subr.bf16.mxu0 %v2983_v25  ;;  %1136 = vmatprep.subr.bf16.mxu1 %v2986_v28  ;;  %v3052_v7 = vld [vmem:[#allocation5 + $0x1ec] ss:$16 sps:$4 sm:$0xff]   ;;  %v3047_v8 = vld [vmem:[#allocation5 + $0x1e0] ss:$16 sps:$4 sm:$0xff]   ;;  %v3050_v9 = vld [vmem:[#allocation5 + $0x1e8] ss:$16 sps:$4 sm:$0xff]  }
  0x63   :  { %v3055_v10 = vld [vmem:[#allocation5 + $0x204] ss:$16 sps:$4 sm:$0xff]   ;;  %v3058_v11 = vld [vmem:[#allocation5 + $0x20c] ss:$16 sps:$4 sm:$0xff]   ;;  %v3633_v13 = vshrl.u32 %v102_v12, 7 }
  0x64   :  { %v3641_v15 = vld [vmem:[%s3707_s2] sm:$0xf] }
  0x65   :  { %1055 = vmatpush1.bf16.msra.mxu0 %v2981_v27  ;;  %1137 = vmatpush1.bf16.msra.mxu1 %v2984_v30  ;;  %v3636_v14 = vsub.s32 0, %v3633_v13  ;;  %v3644_v16 = vsub.s32 1, %v3633_v13  ;;  %v3649_v18 = vsub.s32 3, %v3633_v13 }
  0x66   :  { %1056 = vmatprep.subr.bf16.mxu0 %v2989_v29  ;;  %1138 = vmatprep.subr.bf16.mxu1 %v2992_v32 }
  0x67   :  { %v105_v17 = vrot.slane %v3641_v15, %v3636_v14  ;;  %v109_v19 = vrot.slane %v3641_v15, %v3644_v16  ;;  %v117_v23 = vrot.slane %v3641_v15, %v3649_v18 }
  0x69   :  { %1057 = vmatpush1.bf16.msra.mxu0 %v2987_v31  ;;  %1139 = vmatpush1.bf16.msra.mxu1 %v2990_v34  ;;  %v3053_v34 = vld [vmem:[#allocation5 + $0x200] ss:$16 sps:$4 sm:$0xff]  }
  0x6a   :  { %1058 = vmatprep.subr.bf16.mxu0 %v2995_v33  ;;  %1140 = vmatprep.subr.bf16.mxu1 %v2998_v36 }
  0x6d   :  { %1059 = vmatpush1.bf16.msra.mxu0 %v2993_v35  ;;  %1141 = vmatpush1.bf16.msra.mxu1 %v2996_v38  ;;  %v3056_v35 = vld [vmem:[#allocation5 + $0x208] ss:$16 sps:$4 sm:$0xff]   ;;  %v3061_v38 = vld [vmem:[#allocation5 + $0x224] ss:$16 sps:$4 sm:$0xff]  }
  0x6e   :  { %1060 = vmatprep.subr.bf16.mxu0 %v3001_v37  ;;  %1142 = vmatprep.subr.bf16.mxu1 %v3004_v40 }
  0x71   :  { %1061 = vmatpush1.bf16.msra.mxu0 %v2999_v39  ;;  %1143 = vmatpush1.bf16.msra.mxu1 %v3002_v42  ;;  %v3064_v39 = vld [vmem:[#allocation5 + $0x22c] ss:$16 sps:$4 sm:$0xff]   ;;  %v3059_v42 = vld [vmem:[#allocation5 + $0x220] ss:$16 sps:$4 sm:$0xff]  }
  0x72   :  { %1062 = vmatprep.subr.bf16.mxu0 %v3007_v41  ;;  %1144 = vmatprep.subr.bf16.mxu1 %v3010_v44  ;;  %v3067_v44 = vld [vmem:[#allocation5 + $0x244] ss:$16 sps:$4 sm:$0xff]  }
  0x75   :  { %1063 = vmatpush1.bf16.msra.mxu0 %v3005_v43  ;;  %1145 = vmatpush1.bf16.msra.mxu1 %v3008_v46  ;;  %v3062_v43 = vld [vmem:[#allocation5 + $0x228] ss:$16 sps:$4 sm:$0xff]   ;;  %v3065_v46 = vld [vmem:[#allocation5 + $0x240] ss:$16 sps:$4 sm:$0xff]  }
  0x76   :  { %1064 = vmatprep.subr.bf16.mxu0 %v3013_v45  ;;  %1146 = vmatprep.subr.bf16.mxu1 %v3016_v48  ;;  %v3070_v45 = vld [vmem:[#allocation5 + $0x24c] ss:$16 sps:$4 sm:$0xff]   ;;  %v3073_v48 = vld [vmem:[#allocation5 + $0x264] ss:$16 sps:$4 sm:$0xff]  }
  0x79   :  { %1065 = vmatpush1.bf16.msra.mxu0 %v3011_v47  ;;  %1147 = vmatpush1.bf16.msra.mxu1 %v3014_v50  ;;  %v3068_v47 = vld [vmem:[#allocation5 + $0x248] ss:$16 sps:$4 sm:$0xff]   ;;  %v3071_v50 = vld [vmem:[#allocation5 + $0x260] ss:$16 sps:$4 sm:$0xff]  }
  0x7a   :  { %1066 = vmatprep.subr.bf16.mxu0 %v3019_v49  ;;  %1148 = vmatprep.subr.bf16.mxu1 %v3022_v52  ;;  %v3076_v49 = vld [vmem:[#allocation5 + $0x26c] ss:$16 sps:$4 sm:$0xff]   ;;  %v3079_v52 = vld [vmem:[#allocation5 + $0x284] ss:$16 sps:$4 sm:$0xff]  }
  0x7d   :  { %1067 = vmatpush1.bf16.msra.mxu0 %v3017_v51  ;;  %1149 = vmatpush1.bf16.msra.mxu1 %v3020_v54  ;;  %v3074_v51 = vld [vmem:[#allocation5 + $0x268] ss:$16 sps:$4 sm:$0xff]   ;;  %v3077_v54 = vld [vmem:[#allocation5 + $0x280] ss:$16 sps:$4 sm:$0xff]  }
  0x7e   :  { %1068 = vmatprep.subr.bf16.mxu0 %v3025_v53  ;;  %1150 = vmatprep.subr.bf16.mxu1 %v3028_v56  ;;  %v3082_v53 = vld [vmem:[#allocation5 + $0x28c] ss:$16 sps:$4 sm:$0xff]   ;;  %v3085_v56 = vld [vmem:[#allocation5 + $0x2a4] ss:$16 sps:$4 sm:$0xff]  }
  0x81   :  { %1069 = vmatpush1.bf16.msra.mxu0 %v3023_v55  ;;  %1151 = vmatpush1.bf16.msra.mxu1 %v3026_v58  ;;  %v3080_v55 = vld [vmem:[#allocation5 + $0x288] ss:$16 sps:$4 sm:$0xff]   ;;  %v3083_v58 = vld [vmem:[#allocation5 + $0x2a0] ss:$16 sps:$4 sm:$0xff]  }
  0x82   :  { %1070 = vmatprep.subr.bf16.mxu0 %v3031_v57  ;;  %1152 = vmatprep.subr.bf16.mxu1 %v3034_v60  ;;  %v3088_v57 = vld [vmem:[#allocation5 + $0x2ac] ss:$16 sps:$4 sm:$0xff]   ;;  %v3091_v60 = vld [vmem:[#allocation5 + $0x2c4] ss:$16 sps:$4 sm:$0xff]  }
  0x85   :  { %1071 = vmatpush1.bf16.msra.mxu0 %v3029_v59  ;;  %1153 = vmatpush1.bf16.msra.mxu1 %v3032_v62  ;;  %v3086_v59 = vld [vmem:[#allocation5 + $0x2a8] ss:$16 sps:$4 sm:$0xff]   ;;  %v3089_v62 = vld [vmem:[#allocation5 + $0x2c0] ss:$16 sps:$4 sm:$0xff]  }
  0x86   :  { %1072 = vmatprep.subr.bf16.mxu0 %v3037_v61  ;;  %1154 = vmatprep.subr.bf16.mxu1 %v3040_v0  ;;  %v3094_v61 = vld [vmem:[#allocation5 + $0x2cc] ss:$16 sps:$4 sm:$0xff]   ;;  %v3097_v0 = vld [vmem:[#allocation5 + $0x2e4] ss:$16 sps:$4 sm:$0xff]  }
  0x89   :  { %1073 = vmatpush1.bf16.msra.mxu0 %v3035_v63  ;;  %1155 = vmatpush1.bf16.msra.mxu1 %v3038_v1  ;;  %v3092_v63 = vld [vmem:[#allocation5 + $0x2c8] ss:$16 sps:$4 sm:$0xff]   ;;  %v3100_v1 = vld [vmem:[#allocation5 + $0x2ec] ss:$16 sps:$4 sm:$0xff]  }
  0x8a   :  { %1074 = vmatprep.subr.bf16.mxu0 %v3043_v2  ;;  %1156 = vmatprep.subr.bf16.mxu1 %v3046_v3  ;;  %v3095_v2 = vld [vmem:[#allocation5 + $0x2e0] ss:$16 sps:$4 sm:$0xff]   ;;  %v3098_v3 = vld [vmem:[#allocation5 + $0x2e8] ss:$16 sps:$4 sm:$0xff]  }
  0x8d   :  { %1075 = vmatpush1.bf16.msra.mxu0 %v3041_v4  ;;  %1157 = vmatpush1.bf16.msra.mxu1 %v3044_v5  ;;  %v3103_v4 = vld [vmem:[#allocation5 + $0x304] ss:$16 sps:$4 sm:$0xff]   ;;  %v3106_v5 = vld [vmem:[#allocation5 + $0x30c] ss:$16 sps:$4 sm:$0xff]  }
  0x8e   :  { %1076 = vmatprep.subr.bf16.mxu0 %v3049_v6  ;;  %1158 = vmatprep.subr.bf16.mxu1 %v3052_v7  ;;  %v3101_v6 = vld [vmem:[#allocation5 + $0x300] ss:$16 sps:$4 sm:$0xff]   ;;  %v3104_v7 = vld [vmem:[#allocation5 + $0x308] ss:$16 sps:$4 sm:$0xff]  }
  0x91   :  { %1077 = vmatpush1.bf16.msra.mxu0 %v3047_v8  ;;  %1159 = vmatpush1.bf16.msra.mxu1 %v3050_v9  ;;  %v3109_v8 = vld [vmem:[#allocation5 + $0x324] ss:$16 sps:$4 sm:$0xff]   ;;  %v3112_v9 = vld [vmem:[#allocation5 + $0x32c] ss:$16 sps:$4 sm:$0xff]  }
  0x92   :  { %1087 = vmatprep.subr.bf16.mxu0 %v3055_v10  ;;  %1169 = vmatprep.subr.bf16.mxu1 %v3058_v11  ;;  %v3107_v10 = vld [vmem:[#allocation5 + $0x320] ss:$16 sps:$4 sm:$0xff]   ;;  %v3110_v11 = vld [vmem:[#allocation5 + $0x328] ss:$16 sps:$4 sm:$0xff]  }
 0x127   :  { %v200_v20 = vpop.f32.mrb[0].mxu0  ;;  %v3655_v28 = vpop.f32.mrb[0].mxu1 }
 0x128   :  { %v201_v21 = vadd.f32 %v200_v20, %v105_v17  ;;  %v202_v22 = vpop.f32.mrb[1].mxu0  ;;  %v243_v30 = vpop.f32.mrb[1].mxu1  ;;  %v3115_v17 = vld [vmem:[#allocation5 + $0x344] ss:$16 sps:$4 sm:$0xff]   ;;  %v3113_v20 = vld [vmem:[#allocation5 + $0x340] ss:$16 sps:$4 sm:$0xff]  }
 0x129   :  { %v203_v24 = vadd.f32 %v202_v22, %v109_v19  ;;  %v204_v25 = vpop.f32.mrb[2].mxu0  ;;  %v244_v31 = vadd.f32 %v243_v30, %v117_v23  ;;  %v245_v32 = vpop.f32.mrb[2].mxu1  ;;  %v3118_v19 = vld [vmem:[#allocation5 + $0x34c] ss:$16 sps:$4 sm:$0xff]   ;;  %v3121_v22 = vld [vmem:[#allocation5 + $0x364] ss:$16 sps:$4 sm:$0xff]  }
 0x12a   :  { %v248_v26 = vmax.f32 %v201_v21, 0.0  ;;  %v205_v27 = vpop.f32.mrb[3].mxu0  ;;  %v246_v36 = vpop.f32.mrb[3].mxu1  ;;  %v3116_v21 = vld [vmem:[#allocation5 + $0x348] ss:$16 sps:$4 sm:$0xff]  }
 0x12b   :  { %v249_v29 = vmax.f32 %v203_v24, 0.0  ;;  %v251_v40 = vmax.f32 %v244_v31, 0.0  ;;  %v3124_v23 = vld [vmem:[#allocation5 + $0x36c] ss:$16 sps:$4 sm:$0xff]   ;;  %v3119_v24 = vld [vmem:[#allocation5 + $0x360] ss:$16 sps:$4 sm:$0xff]  }
 0x12c   :  { %v252_v37 = vpack.c.bf16 %v248_v26, %v248_v26  ;;  %v3122_v25 = vld [vmem:[#allocation5 + $0x368] ss:$16 sps:$4 sm:$0xff]   ;;  %v3127_v26 = vld [vmem:[#allocation5 + $0x384] ss:$16 sps:$4 sm:$0xff]   ;;  %v3130_v27 = vld [vmem:[#allocation5 + $0x38c] ss:$16 sps:$4 sm:$0xff]  }
 0x12d   :  { %v253_v33 = vpack.c.bf16 %v249_v29, %v249_v29  ;;  %v255_v41 = vpack.c.bf16 %v251_v40, %v251_v40  ;;  %v3125_v29 = vld [vmem:[#allocation5 + $0x380] ss:$16 sps:$4 sm:$0xff]   ;;  %v3128_v30 = vld [vmem:[#allocation5 + $0x388] ss:$16 sps:$4 sm:$0xff]   ;;  %v3658_v31 = vsub.s32 2, %v3633_v13 }
 0x12e   :  { %v3133_v32 = vld [vmem:[#allocation5 + $0x3a4] ss:$16 sps:$4 sm:$0xff]   ;;  %v3140_v40 = vld [vmem:[#allocation5 + $0x3c8] ss:$16 sps:$4 sm:$0xff]  }
 0x12f   :  { %1078 = vmatprep.mubr.bf16.mxu0 %v253_v33  ;;  %1160 = vmatprep.mubr.bf16.mxu1 %v253_v33  ;;  %v3136_v33 = vld [vmem:[#allocation5 + $0x3ac] ss:$16 sps:$4 sm:$0xff]   ;;  %v113_v36 = vrot.slane %v3641_v15, %v3658_v31  ;;  %v3151_v15 = vld [vmem:[#allocation7 + $0x4] ss:$16 sps:$4 sm:$0xff]  }
 0x130   :  { %1079 = vmatmul.mubr.bf16.vlgmr.msra.gmra.mrb[4].mxu0 %v252_v37  ;;  %1161 = vmatmul.mubr.bf16.vlgmr.msra.gmra.mrb[4].mxu1 %v252_v37  ;;  %v3139_v37 = vld [vmem:[#allocation5 + $0x3c4] ss:$16 sps:$4 sm:$0xff]  }
 0x131   :  { %1088 = vmatpush1.bf16.msra.mxu0 %v3053_v34  ;;  %1170 = vmatpush1.bf16.msra.mxu1 %v3056_v35  ;;  %v3131_v34 = vld [vmem:[#allocation5 + $0x3a0] ss:$16 sps:$4 sm:$0xff]   ;;  %v3134_v35 = vld [vmem:[#allocation5 + $0x3a8] ss:$16 sps:$4 sm:$0xff]   ;;  %v242_v13 = vadd.f32 %v3655_v28, %v113_v36  ;;  %v3157_v28 = vld [vmem:[#allocation7 + $0x24] ss:$16 sps:$4 sm:$0xff]  }
 0x132   :  { %1089 = vmatprep.subr.bf16.mxu0 %v3061_v38  ;;  %1171 = vmatprep.subr.bf16.mxu1 %v3064_v39  ;;  %v3142_v38 = vld [vmem:[#allocation5 + $0x3cc] ss:$16 sps:$4 sm:$0xff]   ;;  %v3137_v39 = vld [vmem:[#allocation5 + $0x3c0] ss:$16 sps:$4 sm:$0xff]   ;;  %v3218_v36 = vld [vmem:[#allocation7 + $0x168] ss:$16 sps:$4 sm:$0xff]  }
 0x133   :  { %1119 = vmatprep.mubr.bf16.mxu0 %v255_v41  ;;  %1201 = vmatprep.mubr.bf16.mxu1 %v255_v41  ;;  %v3145_v41 = vld [vmem:[#allocation5 + $0x3e4] ss:$16 sps:$4 sm:$0xff]  }
 0x135   :  { %1090 = vmatpush1.bf16.msra.mxu0 %v3059_v42  ;;  %1172 = vmatpush1.bf16.msra.mxu1 %v3062_v43  ;;  %v3148_v42 = vld [vmem:[#allocation5 + $0x3ec] ss:$16 sps:$4 sm:$0xff]   ;;  %v3143_v43 = vld [vmem:[#allocation5 + $0x3e0] ss:$16 sps:$4 sm:$0xff]  }
 0x136   :  { %1091 = vmatprep.subr.bf16.mxu0 %v3067_v44  ;;  %1173 = vmatprep.subr.bf16.mxu1 %v3070_v45  ;;  %v3146_v44 = vld [vmem:[#allocation5 + $0x3e8] ss:$16 sps:$4 sm:$0xff]   ;;  %v250_v45 = vmax.f32 %v242_v13, 0.0  ;;  %v3229_v13 = vld [vmem:[#allocation7 + $0x1a4] ss:$16 sps:$4 sm:$0xff]  }
 0x139   :  { %1092 = vmatpush1.bf16.msra.mxu0 %v3065_v46  ;;  %1174 = vmatpush1.bf16.msra.mxu1 %v3068_v47  ;;  %v3154_v46 = vld [vmem:[#allocation7 + $0xc] ss:$16 sps:$4 sm:$0xff]   ;;  %v3149_v47 = vld [vmem:[#allocation7] ss:$16 sps:$4 sm:$0xff]  }
 0x13a   :  { %1093 = vmatprep.subr.bf16.mxu0 %v3073_v48  ;;  %1175 = vmatprep.subr.bf16.mxu1 %v3076_v49  ;;  %v3152_v48 = vld [vmem:[#allocation7 + $0x8] ss:$16 sps:$4 sm:$0xff]   ;;  %v254_v49 = vpack.c.bf16 %v250_v45, %v250_v45  ;;  %v3238_v45 = vld [vmem:[#allocation7 + $0x1cc] ss:$16 sps:$4 sm:$0xff]  }
 0x13d   :  { %1094 = vmatpush1.bf16.msra.mxu0 %v3071_v50  ;;  %1176 = vmatpush1.bf16.msra.mxu1 %v3074_v51  ;;  %v3160_v50 = vld [vmem:[#allocation7 + $0x2c] ss:$16 sps:$4 sm:$0xff]   ;;  %v3155_v51 = vld [vmem:[#allocation7 + $0x20] ss:$16 sps:$4 sm:$0xff]  }
 0x13e   :  { %1095 = vmatprep.subr.bf16.mxu0 %v3079_v52  ;;  %1177 = vmatprep.subr.bf16.mxu1 %v3082_v53  ;;  %v3158_v52 = vld [vmem:[#allocation7 + $0x28] ss:$16 sps:$4 sm:$0xff]   ;;  %v3163_v53 = vld [vmem:[#allocation7 + $0x44] ss:$16 sps:$4 sm:$0xff]  }
 0x141   :  { %1096 = vmatpush1.bf16.msra.mxu0 %v3077_v54  ;;  %1178 = vmatpush1.bf16.msra.mxu1 %v3080_v55  ;;  %v3166_v54 = vld [vmem:[#allocation7 + $0x4c] ss:$16 sps:$4 sm:$0xff]   ;;  %v3161_v55 = vld [vmem:[#allocation7 + $0x40] ss:$16 sps:$4 sm:$0xff]  }
 0x142   :  { %1097 = vmatprep.subr.bf16.mxu0 %v3085_v56  ;;  %1179 = vmatprep.subr.bf16.mxu1 %v3088_v57  ;;  %v3164_v56 = vld [vmem:[#allocation7 + $0x48] ss:$16 sps:$4 sm:$0xff]   ;;  %v3169_v57 = vld [vmem:[#allocation7 + $0x64] ss:$16 sps:$4 sm:$0xff]  }
 0x145   :  { %1098 = vmatpush1.bf16.msra.mxu0 %v3083_v58  ;;  %1180 = vmatpush1.bf16.msra.mxu1 %v3086_v59  ;;  %v3172_v58 = vld [vmem:[#allocation7 + $0x6c] ss:$16 sps:$4 sm:$0xff]   ;;  %v3167_v59 = vld [vmem:[#allocation7 + $0x60] ss:$16 sps:$4 sm:$0xff]  }
 0x146   :  { %1099 = vmatprep.subr.bf16.mxu0 %v3091_v60  ;;  %1181 = vmatprep.subr.bf16.mxu1 %v3094_v61  ;;  %v3170_v60 = vld [vmem:[#allocation7 + $0x68] ss:$16 sps:$4 sm:$0xff]   ;;  %v3175_v61 = vld [vmem:[#allocation7 + $0x84] ss:$16 sps:$4 sm:$0xff]  }
 0x149   :  { %1100 = vmatpush1.bf16.msra.mxu0 %v3089_v62  ;;  %1182 = vmatpush1.bf16.msra.mxu1 %v3092_v63  ;;  %v3178_v62 = vld [vmem:[#allocation7 + $0x8c] ss:$16 sps:$4 sm:$0xff]   ;;  %v3173_v63 = vld [vmem:[#allocation7 + $0x80] ss:$16 sps:$4 sm:$0xff]  }
 0x14a   :  { %1101 = vmatprep.subr.bf16.mxu0 %v3097_v0  ;;  %1183 = vmatprep.subr.bf16.mxu1 %v3100_v1  ;;  %v3176_v0 = vld [vmem:[#allocation7 + $0x88] ss:$16 sps:$4 sm:$0xff]   ;;  %v3181_v1 = vld [vmem:[#allocation7 + $0xa4] ss:$16 sps:$4 sm:$0xff]  }
 0x14d   :  { %1102 = vmatpush1.bf16.msra.mxu0 %v3095_v2  ;;  %1184 = vmatpush1.bf16.msra.mxu1 %v3098_v3  ;;  %v3184_v2 = vld [vmem:[#allocation7 + $0xac] ss:$16 sps:$4 sm:$0xff]   ;;  %v3179_v3 = vld [vmem:[#allocation7 + $0xa0] ss:$16 sps:$4 sm:$0xff]  }
 0x14e   :  { %1103 = vmatprep.subr.bf16.mxu0 %v3103_v4  ;;  %1185 = vmatprep.subr.bf16.mxu1 %v3106_v5  ;;  %v3182_v4 = vld [vmem:[#allocation7 + $0xa8] ss:$16 sps:$4 sm:$0xff]   ;;  %v3187_v5 = vld [vmem:[#allocation7 + $0xc4] ss:$16 sps:$4 sm:$0xff]  }
 0x151   :  { %1104 = vmatpush1.bf16.msra.mxu0 %v3101_v6  ;;  %1186 = vmatpush1.bf16.msra.mxu1 %v3104_v7  ;;  %v3190_v6 = vld [vmem:[#allocation7 + $0xcc] ss:$16 sps:$4 sm:$0xff]   ;;  %v3185_v7 = vld [vmem:[#allocation7 + $0xc0] ss:$16 sps:$4 sm:$0xff]  }
 0x152   :  { %1105 = vmatprep.subr.bf16.mxu0 %v3109_v8  ;;  %1187 = vmatprep.subr.bf16.mxu1 %v3112_v9  ;;  %v3188_v8 = vld [vmem:[#allocation7 + $0xc8] ss:$16 sps:$4 sm:$0xff]   ;;  %v3193_v9 = vld [vmem:[#allocation7 + $0xe4] ss:$16 sps:$4 sm:$0xff]  }
 0x155   :  { %1106 = vmatpush1.bf16.msra.mxu0 %v3107_v10  ;;  %1188 = vmatpush1.bf16.msra.mxu1 %v3110_v11  ;;  %v3196_v10 = vld [vmem:[#allocation7 + $0xec] ss:$16 sps:$4 sm:$0xff]   ;;  %v3191_v11 = vld [vmem:[#allocation7 + $0xe0] ss:$16 sps:$4 sm:$0xff]  }
 0x156   :  { %1107 = vmatprep.subr.bf16.mxu0 %v3115_v17  ;;  %1189 = vmatprep.subr.bf16.mxu1 %v3118_v19  ;;  %v3194_v17 = vld [vmem:[#allocation7 + $0xe8] ss:$16 sps:$4 sm:$0xff]   ;;  %v3199_v19 = vld [vmem:[#allocation7 + $0x104] ss:$16 sps:$4 sm:$0xff]  }
 0x159   :  { %1108 = vmatpush1.bf16.msra.mxu0 %v3113_v20  ;;  %1190 = vmatpush1.bf16.msra.mxu1 %v3116_v21  ;;  %v3202_v20 = vld [vmem:[#allocation7 + $0x10c] ss:$16 sps:$4 sm:$0xff]   ;;  %v3197_v21 = vld [vmem:[#allocation7 + $0x100] ss:$16 sps:$4 sm:$0xff]  }
 0x15a   :  { %1109 = vmatprep.subr.bf16.mxu0 %v3121_v22  ;;  %1191 = vmatprep.subr.bf16.mxu1 %v3124_v23  ;;  %v3200_v22 = vld [vmem:[#allocation7 + $0x108] ss:$16 sps:$4 sm:$0xff]   ;;  %v3205_v23 = vld [vmem:[#allocation7 + $0x124] ss:$16 sps:$4 sm:$0xff]  }
 0x15d   :  { %1110 = vmatpush1.bf16.msra.mxu0 %v3119_v24  ;;  %1192 = vmatpush1.bf16.msra.mxu1 %v3122_v25  ;;  %v3208_v24 = vld [vmem:[#allocation7 + $0x12c] ss:$16 sps:$4 sm:$0xff]   ;;  %v3203_v25 = vld [vmem:[#allocation7 + $0x120] ss:$16 sps:$4 sm:$0xff]  }
 0x15e   :  { %1111 = vmatprep.subr.bf16.mxu0 %v3127_v26  ;;  %1193 = vmatprep.subr.bf16.mxu1 %v3130_v27  ;;  %v3206_v26 = vld [vmem:[#allocation7 + $0x128] ss:$16 sps:$4 sm:$0xff]   ;;  %v3211_v27 = vld [vmem:[#allocation7 + $0x144] ss:$16 sps:$4 sm:$0xff]  }
 0x161   :  { %1112 = vmatpush1.bf16.msra.mxu0 %v3125_v29  ;;  %1194 = vmatpush1.bf16.msra.mxu1 %v3128_v30  ;;  %v3214_v29 = vld [vmem:[#allocation7 + $0x14c] ss:$16 sps:$4 sm:$0xff]   ;;  %v3209_v30 = vld [vmem:[#allocation7 + $0x140] ss:$16 sps:$4 sm:$0xff]  }
 0x162   :  { %1113 = vmatprep.subr.bf16.mxu0 %v3133_v32  ;;  %1195 = vmatprep.subr.bf16.mxu1 %v3136_v33  ;;  %v3212_v32 = vld [vmem:[#allocation7 + $0x148] ss:$16 sps:$4 sm:$0xff]   ;;  %v3217_v33 = vld [vmem:[#allocation7 + $0x164] ss:$16 sps:$4 sm:$0xff]  }
 0x165   :  { %1114 = vmatpush1.bf16.msra.mxu0 %v3131_v34  ;;  %1196 = vmatpush1.bf16.msra.mxu1 %v3134_v35  ;;  %v3220_v34 = vld [vmem:[#allocation7 + $0x16c] ss:$16 sps:$4 sm:$0xff]   ;;  %v3215_v35 = vld [vmem:[#allocation7 + $0x160] ss:$16 sps:$4 sm:$0xff]  }
 0x166   :  { %1115 = vmatprep.subr.bf16.mxu0 %v3139_v37  ;;  %1197 = vmatprep.subr.bf16.mxu1 %v3142_v38  ;;  %v3223_v37 = vld [vmem:[#allocation7 + $0x184] ss:$16 sps:$4 sm:$0xff]   ;;  %v3226_v38 = vld [vmem:[#allocation7 + $0x18c] ss:$16 sps:$4 sm:$0xff]  }
 0x169   :  { %1116 = vmatpush1.bf16.msra.mxu0 %v3137_v39  ;;  %1198 = vmatpush1.bf16.msra.mxu1 %v3140_v40  ;;  %v3221_v39 = vld [vmem:[#allocation7 + $0x180] ss:$16 sps:$4 sm:$0xff]   ;;  %v3224_v40 = vld [vmem:[#allocation7 + $0x188] ss:$16 sps:$4 sm:$0xff]  }
 0x16a   :  { %1117 = vmatprep.subr.bf16.mxu0 %v3145_v41  ;;  %1199 = vmatprep.subr.bf16.mxu1 %v3148_v42  ;;  %v3232_v41 = vld [vmem:[#allocation7 + $0x1ac] ss:$16 sps:$4 sm:$0xff]   ;;  %v3227_v42 = vld [vmem:[#allocation7 + $0x1a0] ss:$16 sps:$4 sm:$0xff]  }
 0x16d   :  { %1118 = vmatpush1.bf16.msra.mxu0 %v3143_v43  ;;  %1200 = vmatpush1.bf16.msra.mxu1 %v3146_v44  ;;  %v3230_v43 = vld [vmem:[#allocation7 + $0x1a8] ss:$16 sps:$4 sm:$0xff]   ;;  %v3235_v44 = vld [vmem:[#allocation7 + $0x1c4] ss:$16 sps:$4 sm:$0xff]  }
 0x16e   :  { %2008 = vmatprep.subr.bf16.mxu0 %v3151_v15  ;;  %2090 = vmatprep.subr.bf16.mxu1 %v3154_v46  ;;  %v3233_v15 = vld [vmem:[#allocation7 + $0x1c0] ss:$16 sps:$4 sm:$0xff]   ;;  %v3236_v46 = vld [vmem:[#allocation7 + $0x1c8] ss:$16 sps:$4 sm:$0xff]  }
 0x170   :  { %1120 = vmatmul.mubr.bf16.vlgmr.msra.gmra.mrb[4].mxu0 %v254_v49  ;;  %1202 = vmatmul.mubr.bf16.vlgmr.msra.gmra.mrb[4].mxu1 %v254_v49  ;;  %v3239_v49 = vld [vmem:[#allocation7 + $0x1e0] ss:$16 sps:$4 sm:$0xff]  }
 0x171   :  { %2009 = vmatpush1.bf16.msra.mxu0 %v3149_v47  ;;  %2091 = vmatpush1.bf16.msra.mxu1 %v3152_v48  ;;  %v3241_v47 = vld [vmem:[#allocation7 + $0x1e4] ss:$16 sps:$4 sm:$0xff]   ;;  %v3244_v48 = vld [vmem:[#allocation7 + $0x1ec] ss:$16 sps:$4 sm:$0xff]  }
 0x172   :  { %2010 = vmatprep.subr.bf16.mxu0 %v3157_v28  ;;  %2092 = vmatprep.subr.bf16.mxu1 %v3160_v50  ;;  %v3242_v28 = vld [vmem:[#allocation7 + $0x1e8] ss:$16 sps:$4 sm:$0xff]   ;;  %v3247_v50 = vld [vmem:[#allocation7 + $0x204] ss:$16 sps:$4 sm:$0xff]  }
 0x175   :  { %2011 = vmatpush1.bf16.msra.mxu0 %v3155_v51  ;;  %2093 = vmatpush1.bf16.msra.mxu1 %v3158_v52  ;;  %v3250_v51 = vld [vmem:[#allocation7 + $0x20c] ss:$16 sps:$4 sm:$0xff]   ;;  %v3666_v52 = vld [vmem:[%s3709_s4] sm:$0xf] }
 0x176   :  { %2012 = vmatprep.subr.bf16.mxu0 %v3163_v53  ;;  %2094 = vmatprep.subr.bf16.mxu1 %v3166_v54  ;;  %v389_v53 = vrot.slane %v3666_v52, %v3636_v14  ;;  %v393_v54 = vrot.slane %v3666_v52, %v3644_v16 }
 0x179   :  { %2013 = vmatpush1.bf16.msra.mxu0 %v3161_v55  ;;  %2095 = vmatpush1.bf16.msra.mxu1 %v3164_v56  ;;  %v401_v55 = vrot.slane %v3666_v52, %v3649_v18 }
 0x17a   :  { %2014 = vmatprep.subr.bf16.mxu0 %v3169_v57  ;;  %2096 = vmatprep.subr.bf16.mxu1 %v3172_v58 }
 0x17d   :  { %2015 = vmatpush1.bf16.msra.mxu0 %v3167_v59  ;;  %2097 = vmatpush1.bf16.msra.mxu1 %v3170_v60 }
 0x17e   :  { %2016 = vmatprep.subr.bf16.mxu0 %v3175_v61  ;;  %2098 = vmatprep.subr.bf16.mxu1 %v3178_v62 }
 0x181   :  { %2017 = vmatpush1.bf16.msra.mxu0 %v3173_v63  ;;  %2099 = vmatpush1.bf16.msra.mxu1 %v3176_v0 }
 0x182   :  { %2018 = vmatprep.subr.bf16.mxu0 %v3181_v1  ;;  %2100 = vmatprep.subr.bf16.mxu1 %v3184_v2 }
 0x185   :  { %2019 = vmatpush1.bf16.msra.mxu0 %v3179_v3  ;;  %2101 = vmatpush1.bf16.msra.mxu1 %v3182_v4 }
 0x186   :  { %2020 = vmatprep.subr.bf16.mxu0 %v3187_v5  ;;  %2102 = vmatprep.subr.bf16.mxu1 %v3190_v6 }
 0x189   :  { %2021 = vmatpush1.bf16.msra.mxu0 %v3185_v7  ;;  %2103 = vmatpush1.bf16.msra.mxu1 %v3188_v8  ;;  %v3245_v7 = vld [vmem:[#allocation7 + $0x200] ss:$16 sps:$4 sm:$0xff]   ;;  %v3248_v8 = vld [vmem:[#allocation7 + $0x208] ss:$16 sps:$4 sm:$0xff]  }
 0x18a   :  { %2022 = vmatprep.subr.bf16.mxu0 %v3193_v9  ;;  %2104 = vmatprep.subr.bf16.mxu1 %v3196_v10  ;;  %v3253_v10 = vld [vmem:[#allocation7 + $0x224] ss:$16 sps:$4 sm:$0xff]  }
 0x18d   :  { %2023 = vmatpush1.bf16.msra.mxu0 %v3191_v11  ;;  %2105 = vmatpush1.bf16.msra.mxu1 %v3194_v17  ;;  %v3256_v11 = vld [vmem:[#allocation7 + $0x22c] ss:$16 sps:$4 sm:$0xff]  }
 0x18e   :  { %2024 = vmatprep.subr.bf16.mxu0 %v3199_v19  ;;  %2106 = vmatprep.subr.bf16.mxu1 %v3202_v20  ;;  %v3251_v19 = vld [vmem:[#allocation7 + $0x220] ss:$16 sps:$4 sm:$0xff]   ;;  %v3254_v20 = vld [vmem:[#allocation7 + $0x228] ss:$16 sps:$4 sm:$0xff]  }
 0x191   :  { %2025 = vmatpush1.bf16.msra.mxu0 %v3197_v21  ;;  %2107 = vmatpush1.bf16.msra.mxu1 %v3200_v22  ;;  %v3259_v21 = vld [vmem:[#allocation7 + $0x244] ss:$16 sps:$4 sm:$0xff]   ;;  %v3262_v22 = vld [vmem:[#allocation7 + $0x24c] ss:$16 sps:$4 sm:$0xff]  }
 0x192   :  { %2026 = vmatprep.subr.bf16.mxu0 %v3205_v23  ;;  %2108 = vmatprep.subr.bf16.mxu1 %v3208_v24  ;;  %v3257_v23 = vld [vmem:[#allocation7 + $0x240] ss:$16 sps:$4 sm:$0xff]   ;;  %v3260_v24 = vld [vmem:[#allocation7 + $0x248] ss:$16 sps:$4 sm:$0xff]  }
 0x195   :  { %2027 = vmatpush1.bf16.msra.mxu0 %v3203_v25  ;;  %2109 = vmatpush1.bf16.msra.mxu1 %v3206_v26  ;;  %v3265_v25 = vld [vmem:[#allocation7 + $0x264] ss:$16 sps:$4 sm:$0xff]   ;;  %v3268_v26 = vld [vmem:[#allocation7 + $0x26c] ss:$16 sps:$4 sm:$0xff]  }
 0x196   :  { %2028 = vmatprep.subr.bf16.mxu0 %v3211_v27  ;;  %2110 = vmatprep.subr.bf16.mxu1 %v3214_v29  ;;  %v3263_v27 = vld [vmem:[#allocation7 + $0x260] ss:$16 sps:$4 sm:$0xff]   ;;  %v3266_v29 = vld [vmem:[#allocation7 + $0x268] ss:$16 sps:$4 sm:$0xff]  }
 0x199   :  { %2029 = vmatpush1.bf16.msra.mxu0 %v3209_v30  ;;  %2111 = vmatpush1.bf16.msra.mxu1 %v3212_v32  ;;  %v3271_v30 = vld [vmem:[#allocation7 + $0x284] ss:$16 sps:$4 sm:$0xff]   ;;  %v3274_v32 = vld [vmem:[#allocation7 + $0x28c] ss:$16 sps:$4 sm:$0xff]  }
 0x19a   :  { %2030 = vmatprep.subr.bf16.mxu0 %v3217_v33  ;;  %2112 = vmatprep.subr.bf16.mxu1 %v3220_v34  ;;  %v3269_v33 = vld [vmem:[#allocation7 + $0x280] ss:$16 sps:$4 sm:$0xff]   ;;  %v3272_v34 = vld [vmem:[#allocation7 + $0x288] ss:$16 sps:$4 sm:$0xff]  }
 0x19d   :  { %2031 = vmatpush1.bf16.msra.mxu0 %v3215_v35  ;;  %2113 = vmatpush1.bf16.msra.mxu1 %v3218_v36  ;;  %v3277_v35 = vld [vmem:[#allocation7 + $0x2a4] ss:$16 sps:$4 sm:$0xff]   ;;  %v3280_v36 = vld [vmem:[#allocation7 + $0x2ac] ss:$16 sps:$4 sm:$0xff]  }
 0x19e   :  { %2032 = vmatprep.subr.bf16.mxu0 %v3223_v37  ;;  %2114 = vmatprep.subr.bf16.mxu1 %v3226_v38  ;;  %v3275_v37 = vld [vmem:[#allocation7 + $0x2a0] ss:$16 sps:$4 sm:$0xff]   ;;  %v3278_v38 = vld [vmem:[#allocation7 + $0x2a8] ss:$16 sps:$4 sm:$0xff]  }
 0x1a1   :  { %2033 = vmatpush1.bf16.msra.mxu0 %v3221_v39  ;;  %2115 = vmatpush1.bf16.msra.mxu1 %v3224_v40  ;;  %v3283_v39 = vld [vmem:[#allocation7 + $0x2c4] ss:$16 sps:$4 sm:$0xff]   ;;  %v3286_v40 = vld [vmem:[#allocation7 + $0x2cc] ss:$16 sps:$4 sm:$0xff]  }
 0x1a2   :  { %2034 = vmatprep.subr.bf16.mxu0 %v3229_v13  ;;  %2116 = vmatprep.subr.bf16.mxu1 %v3232_v41  ;;  %v3281_v13 = vld [vmem:[#allocation7 + $0x2c0] ss:$16 sps:$4 sm:$0xff]   ;;  %v3284_v41 = vld [vmem:[#allocation7 + $0x2c8] ss:$16 sps:$4 sm:$0xff]  }
 0x1a5   :  { %2035 = vmatpush1.bf16.msra.mxu0 %v3227_v42  ;;  %2117 = vmatpush1.bf16.msra.mxu1 %v3230_v43  ;;  %v3289_v42 = vld [vmem:[#allocation7 + $0x2e4] ss:$16 sps:$4 sm:$0xff]   ;;  %v3292_v43 = vld [vmem:[#allocation7 + $0x2ec] ss:$16 sps:$4 sm:$0xff]  }
 0x1a6   :  { %2036 = vmatprep.subr.bf16.mxu0 %v3235_v44  ;;  %2118 = vmatprep.subr.bf16.mxu1 %v3238_v45  ;;  %v3287_v44 = vld [vmem:[#allocation7 + $0x2e0] ss:$16 sps:$4 sm:$0xff]   ;;  %v3290_v45 = vld [vmem:[#allocation7 + $0x2e8] ss:$16 sps:$4 sm:$0xff]  }
 0x1a9   :  { %2037 = vmatpush1.bf16.msra.mxu0 %v3233_v15  ;;  %2119 = vmatpush1.bf16.msra.mxu1 %v3236_v46  ;;  %v3295_v15 = vld [vmem:[#allocation7 + $0x304] ss:$16 sps:$4 sm:$0xff]   ;;  %v3298_v46 = vld [vmem:[#allocation7 + $0x30c] ss:$16 sps:$4 sm:$0xff]  }
 0x1aa   :  { %2038 = vmatprep.subr.bf16.mxu0 %v3241_v47  ;;  %2120 = vmatprep.subr.bf16.mxu1 %v3244_v48  ;;  %v3293_v47 = vld [vmem:[#allocation7 + $0x300] ss:$16 sps:$4 sm:$0xff]   ;;  %v3296_v48 = vld [vmem:[#allocation7 + $0x308] ss:$16 sps:$4 sm:$0xff]  }
 0x1ad   :  { %2039 = vmatpush1.bf16.msra.mxu0 %v3239_v49  ;;  %2121 = vmatpush1.bf16.msra.mxu1 %v3242_v28  ;;  %v3301_v49 = vld [vmem:[#allocation7 + $0x324] ss:$16 sps:$4 sm:$0xff]   ;;  %v3304_v28 = vld [vmem:[#allocation7 + $0x32c] ss:$16 sps:$4 sm:$0xff]  }
 0x1ae   :  { %2049 = vmatprep.subr.bf16.mxu0 %v3247_v50  ;;  %2131 = vmatprep.subr.bf16.mxu1 %v3250_v51  ;;  %v3299_v50 = vld [vmem:[#allocation7 + $0x320] ss:$16 sps:$4 sm:$0xff]   ;;  %v3302_v51 = vld [vmem:[#allocation7 + $0x328] ss:$16 sps:$4 sm:$0xff]  }
 0x243   :  { %v1121_v56 = vpop.f32.mrb[4].mxu0  ;;  %v3674_v57 = vpop.f32.mrb[4].mxu1 }
 0x244   :  { %v2911_v58 = vadd.f32 %v1121_v56, %v389_v53  ;;  %v1123_v59 = vpop.f32.mrb[5].mxu0  ;;  %v1205_v60 = vpop.f32.mrb[5].mxu1  ;;  %v3307_v53 = vld [vmem:[#allocation7 + $0x344] ss:$16 sps:$4 sm:$0xff]   ;;  %v3308_v56 = vld [vmem:[#allocation7 + $0x348] ss:$16 sps:$4 sm:$0xff]  }
 0x245   :  { %v2912_v61 = vadd.f32 %v1123_v59, %v393_v54  ;;  %v2914_v62 = vadd.f32 %v1205_v60, %v401_v55  ;;  %v1125_v63 = vpop.f32.mrb[6].mxu0  ;;  %v1207_v0 = vpop.f32.mrb[6].mxu1  ;;  %v3310_v54 = vld [vmem:[#allocation7 + $0x34c] ss:$16 sps:$4 sm:$0xff]   ;;  %v3305_v55 = vld [vmem:[#allocation7 + $0x340] ss:$16 sps:$4 sm:$0xff]  }
 0x246   :  { %v1210_v1 = vmax.f32 %v2911_v58, 0.0  ;;  %v1126_v2 = vpop.f32.mrb[7].mxu0  ;;  %v1208_v3 = vpop.f32.mrb[7].mxu1  ;;  %v3313_v58 = vld [vmem:[#allocation7 + $0x364] ss:$16 sps:$4 sm:$0xff]  }
 0x247   :  { %v1211_v4 = vmax.f32 %v2912_v61, 0.0  ;;  %v1213_v5 = vmax.f32 %v2914_v62, 0.0  ;;  %v3316_v59 = vld [vmem:[#allocation7 + $0x36c] ss:$16 sps:$4 sm:$0xff]   ;;  %v3311_v60 = vld [vmem:[#allocation7 + $0x360] ss:$16 sps:$4 sm:$0xff]  }
 0x248   :  { %v1214_v9 = vpack.c.bf16 %v1210_v1, %v1210_v1  ;;  %v3314_v61 = vld [vmem:[#allocation7 + $0x368] ss:$16 sps:$4 sm:$0xff]   ;;  %v3319_v62 = vld [vmem:[#allocation7 + $0x384] ss:$16 sps:$4 sm:$0xff]   ;;  %v3322_v63 = vld [vmem:[#allocation7 + $0x38c] ss:$16 sps:$4 sm:$0xff]  }
 0x249   :  { %v1215_v6 = vpack.c.bf16 %v1211_v4, %v1211_v4  ;;  %v1217_v17 = vpack.c.bf16 %v1213_v5, %v1213_v5  ;;  %v3317_v0 = vld [vmem:[#allocation7 + $0x380] ss:$16 sps:$4 sm:$0xff]   ;;  %v3320_v1 = vld [vmem:[#allocation7 + $0x388] ss:$16 sps:$4 sm:$0xff]   ;;  %v3325_v2 = vld [vmem:[#allocation7 + $0x3a4] ss:$16 sps:$4 sm:$0xff]  }
 0x24a   :  { %v3328_v3 = vld [vmem:[#allocation7 + $0x3ac] ss:$16 sps:$4 sm:$0xff]   ;;  %v3323_v4 = vld [vmem:[#allocation7 + $0x3a0] ss:$16 sps:$4 sm:$0xff]   ;;  %v3326_v5 = vld [vmem:[#allocation7 + $0x3a8] ss:$16 sps:$4 sm:$0xff]  }
 0x24b   :  { %2040 = vmatprep.mubr.bf16.mxu0 %v1215_v6  ;;  %2122 = vmatprep.mubr.bf16.mxu1 %v1215_v6  ;;  %v397_v6 = vrot.slane %v3666_v52, %v3658_v31  ;;  %v3341_v52 = vld [vmem:[#allocation8 + $0x40] sm:$0xff]  }
 0x24c   :  { %2041 = vmatmul.mubr.bf16.vlgmr.msra.gmra.mrb[8].mxu0 %v1214_v9  ;;  %2123 = vmatmul.mubr.bf16.vlgmr.msra.gmra.mrb[8].mxu1 %v1214_v9  ;;  %v3329_v9 = vld [vmem:[#allocation7 + $0x3c0] ss:$16 sps:$4 sm:$0xff]  }
 0x24d   :  { %2050 = vmatpush1.bf16.msra.mxu0 %v3245_v7  ;;  %2132 = vmatpush1.bf16.msra.mxu1 %v3248_v8  ;;  %v3331_v7 = vld [vmem:[#allocation7 + $0x3c4] ss:$16 sps:$4 sm:$0xff]   ;;  %v3334_v8 = vld [vmem:[#allocation7 + $0x3cc] ss:$16 sps:$4 sm:$0xff]  }
 0x24e   :  { %2081 = vmatprep.mubr.bf16.mxu0 %v1217_v17  ;;  %2163 = vmatprep.mubr.bf16.mxu1 %v1217_v17  ;;  %v3337_v17 = vld [vmem:[#allocation7 + $0x3e4] ss:$16 sps:$4 sm:$0xff]  }
 0x24f   :  { %2051 = vmatprep.subr.bf16.mxu0 %v3253_v10  ;;  %2133 = vmatprep.subr.bf16.mxu1 %v3256_v11  ;;  %v3332_v10 = vld [vmem:[#allocation7 + $0x3c8] ss:$16 sps:$4 sm:$0xff]   ;;  %v2913_v11 = vadd.f32 %v3674_v57, %v397_v6 }
 0x250   :  { %v3345_v57 = vld [vmem:[#allocation8 + $0x48] sm:$0xff]  }
 0x251   :  { %2052 = vmatpush1.bf16.msra.mxu0 %v3251_v19  ;;  %2134 = vmatpush1.bf16.msra.mxu1 %v3254_v20  ;;  %v3340_v19 = vld [vmem:[#allocation7 + $0x3ec] ss:$16 sps:$4 sm:$0xff]   ;;  %v3335_v20 = vld [vmem:[#allocation7 + $0x3e0] ss:$16 sps:$4 sm:$0xff]  }
 0x252   :  { %2053 = vmatprep.subr.bf16.mxu0 %v3259_v21  ;;  %2135 = vmatprep.subr.bf16.mxu1 %v3262_v22  ;;  %v3338_v21 = vld [vmem:[#allocation7 + $0x3e8] ss:$16 sps:$4 sm:$0xff]   ;;  %v1212_v22 = vmax.f32 %v2913_v11, 0.0 }
 0x255   :  { %2054 = vmatpush1.bf16.msra.mxu0 %v3257_v23  ;;  %2136 = vmatpush1.bf16.msra.mxu1 %v3260_v24  ;;  %v3342_v23 = vld [vmem:[#allocation8 + $0xc0] sm:$0xff]  }
 0x256   :  { %2055 = vmatprep.subr.bf16.mxu0 %v3265_v25  ;;  %2137 = vmatprep.subr.bf16.mxu1 %v3268_v26  ;;  %v3343_v24 = vld [vmem:[#allocation8] sm:$0xff]   ;;  %v1216_v26 = vpack.c.bf16 %v1212_v22, %v1212_v22 }
 0x257   :  { %v3344_v25 = vld [vmem:[#allocation8 + $0x80] sm:$0xff]  }
 0x259   :  { %2056 = vmatpush1.bf16.msra.mxu0 %v3263_v27  ;;  %2138 = vmatpush1.bf16.msra.mxu1 %v3266_v29  ;;  %v3346_v27 = vld [vmem:[#allocation8 + $0xc8] sm:$0xff]  }
 0x25a   :  { %2057 = vmatprep.subr.bf16.mxu0 %v3271_v30  ;;  %2139 = vmatprep.subr.bf16.mxu1 %v3274_v32  ;;  %v3347_v29 = vld [vmem:[#allocation8 + $0x8] sm:$0xff]   ;;  %v3349_v32 = vld [vmem:[#allocation8 + $0x50] sm:$0xff]  }
 0x25b   :  { %v3348_v30 = vld [vmem:[#allocation8 + $0x88] sm:$0xff]  }
 0x25d   :  { %2058 = vmatpush1.bf16.msra.mxu0 %v3269_v33  ;;  %2140 = vmatpush1.bf16.msra.mxu1 %v3272_v34  ;;  %v3350_v33 = vld [vmem:[#allocation8 + $0xd0] sm:$0xff]  }
 0x25e   :  { %2059 = vmatprep.subr.bf16.mxu0 %v3277_v35  ;;  %2141 = vmatprep.subr.bf16.mxu1 %v3280_v36  ;;  %v3351_v34 = vld [vmem:[#allocation8 + $0x10] sm:$0xff]   ;;  %v3353_v36 = vld [vmem:[#allocation8 + $0x58] sm:$0xff]  }
 0x25f   :  { %v3352_v35 = vld [vmem:[#allocation8 + $0x90] sm:$0xff]  }
 0x261   :  { %2060 = vmatpush1.bf16.msra.mxu0 %v3275_v37  ;;  %2142 = vmatpush1.bf16.msra.mxu1 %v3278_v38  ;;  %v3354_v37 = vld [vmem:[#allocation8 + $0xd8] sm:$0xff]  }
 0x262   :  { %2061 = vmatprep.subr.bf16.mxu0 %v3283_v39  ;;  %2143 = vmatprep.subr.bf16.mxu1 %v3286_v40  ;;  %v3355_v38 = vld [vmem:[#allocation8 + $0x18] sm:$0xff]   ;;  %v3357_v40 = vld [vmem:[#allocation8 + $0x60] sm:$0xff]  }
 0x263   :  { %v3356_v39 = vld [vmem:[#allocation8 + $0x98] sm:$0xff]  }
 0x265   :  { %2062 = vmatpush1.bf16.msra.mxu0 %v3281_v13  ;;  %2144 = vmatpush1.bf16.msra.mxu1 %v3284_v41  ;;  %v3358_v13 = vld [vmem:[#allocation8 + $0xe0] sm:$0xff]  }
 0x266   :  { %2063 = vmatprep.subr.bf16.mxu0 %v3289_v42  ;;  %2145 = vmatprep.subr.bf16.mxu1 %v3292_v43  ;;  %v3359_v41 = vld [vmem:[#allocation8 + $0x20] sm:$0xff]   ;;  %v3361_v43 = vld [vmem:[#allocation8 + $0x68] sm:$0xff]  }
 0x267   :  { %v3360_v42 = vld [vmem:[#allocation8 + $0xa0] sm:$0xff]  }
 0x269   :  { %2064 = vmatpush1.bf16.msra.mxu0 %v3287_v44  ;;  %2146 = vmatpush1.bf16.msra.mxu1 %v3290_v45  ;;  %v3362_v44 = vld [vmem:[#allocation8 + $0xe8] sm:$0xff]  }
 0x26a   :  { %2065 = vmatprep.subr.bf16.mxu0 %v3295_v15  ;;  %2147 = vmatprep.subr.bf16.mxu1 %v3298_v46  ;;  %v3363_v45 = vld [vmem:[#allocation8 + $0x28] sm:$0xff]   ;;  %v3365_v46 = vld [vmem:[#allocation8 + $0x70] sm:$0xff]  }
 0x26b   :  { %v3364_v15 = vld [vmem:[#allocation8 + $0xa8] sm:$0xff]  }
 0x26d   :  { %2066 = vmatpush1.bf16.msra.mxu0 %v3293_v47  ;;  %2148 = vmatpush1.bf16.msra.mxu1 %v3296_v48  ;;  %v3366_v47 = vld [vmem:[#allocation8 + $0xf0] sm:$0xff]  }
 0x26e   :  { %2067 = vmatprep.subr.bf16.mxu0 %v3301_v49  ;;  %2149 = vmatprep.subr.bf16.mxu1 %v3304_v28  ;;  %v3367_v48 = vld [vmem:[#allocation8 + $0x30] sm:$0xff]   ;;  %v3369_v28 = vld [vmem:[#allocation8 + $0x78] sm:$0xff]  }
 0x26f   :  { %v3368_v49 = vld [vmem:[#allocation8 + $0xb0] sm:$0xff]  }
 0x271   :  { %2068 = vmatpush1.bf16.msra.mxu0 %v3299_v50  ;;  %2150 = vmatpush1.bf16.msra.mxu1 %v3302_v51  ;;  %v3370_v50 = vld [vmem:[#allocation8 + $0xf8] sm:$0xff]  }
 0x272   :  { %2069 = vmatprep.subr.bf16.mxu0 %v3307_v53  ;;  %2151 = vmatprep.subr.bf16.mxu1 %v3310_v54  ;;  %v3371_v51 = vld [vmem:[#allocation8 + $0x38] sm:$0xff]   ;;  %v1346_v54 = vld [vmem:[%s3711_s6] sm:$0xf]  ;;  %s3502_s6 = smov [#allocation10]  }
 0x273   :  { %v3372_v53 = vld [vmem:[#allocation8 + $0xb8] sm:$0xff]   ;;  %s2551_s28 = sshll.u32 %s3502_s6, 4  ;;  %s2552_s28 = int_to_ptr.vmem [resolvable:$true] %s2551_s28 }
 0x274   :  { %s3463_s29 = scalar_lea.vmem %s2552_s28, 256  ;;  %p3468_p5 = scmp.lt.s32.totalorder %s2552_s28, %s2552_s28 }
 0x275   :  { %2070 = vmatpush1.bf16.msra.mxu0 %v3305_v55  ;;  %2152 = vmatpush1.bf16.msra.mxu1 %v3308_v56  ;;  %v1351_v55 = vrot.slane %v1346_v54, %v3636_v14  ;;  %v1359_v56 = vrot.slane %v1346_v54, %v3658_v31  ;;  %p3464_p4 = scmp.ne.s32.totalorder %s2552_s28, %s3463_s29  ;;  %p3469_p6 = scmp.lt.s32.totalorder %s3463_s29, %s3463_s29 }
 0x276   :  { %2071 = vmatprep.subr.bf16.mxu0 %v3313_v58  ;;  %2153 = vmatprep.subr.bf16.mxu1 %v3316_v59  ;;  %v1355_v58 = vrot.slane %v1346_v54, %v3644_v16  ;;  %v1363_v59 = vrot.slane %v1346_v54, %v3649_v18 }
 0x277   :  { %p3470_p7 = por %p3469_p6, %p3468_p5 }
 0x279   :  { %2072 = vmatpush1.bf16.msra.mxu0 %v3311_v60  ;;  %2154 = vmatpush1.bf16.msra.mxu1 %v3314_v61  ;;  %p3471_p8 = pnand %p3470_p7, %p3464_p4 }
 0x27a   :  { %2073 = vmatprep.subr.bf16.mxu0 %v3319_v62  ;;  %2155 = vmatprep.subr.bf16.mxu1 %v3322_v63 }
 0x27d   :  { %2074 = vmatpush1.bf16.msra.mxu0 %v3317_v0  ;;  %2156 = vmatpush1.bf16.msra.mxu1 %v3320_v1 }
 0x27e   :  { %2075 = vmatprep.subr.bf16.mxu0 %v3325_v2  ;;  %2157 = vmatprep.subr.bf16.mxu1 %v3328_v3 }
 0x281   :  { %2076 = vmatpush1.bf16.msra.mxu0 %v3323_v4  ;;  %2158 = vmatpush1.bf16.msra.mxu1 %v3326_v5 }
 0x282   :  { %2077 = vmatprep.subr.bf16.mxu0 %v3331_v7  ;;  %2159 = vmatprep.subr.bf16.mxu1 %v3334_v8 }
 0x285   :  { %2078 = vmatpush1.bf16.msra.mxu0 %v3329_v9  ;;  %2160 = vmatpush1.bf16.msra.mxu1 %v3332_v10 }
 0x286   :  { %2079 = vmatprep.subr.bf16.mxu0 %v3337_v17  ;;  %2161 = vmatprep.subr.bf16.mxu1 %v3340_v19 }
 0x289   :  { %2080 = vmatpush1.bf16.msra.mxu0 %v3335_v20  ;;  %2162 = vmatpush1.bf16.msra.mxu1 %v3338_v21 }
 0x28a   :  { %2867 = vmatprep.subr.bf16.mxu0 %v3341_v52  ;;  %2889 = vmatprep.subr.bf16.mxu1 %v3342_v23 }
 0x28c   :  { %2082 = vmatmul.mubr.bf16.vlgmr.msra.gmra.mrb[8].mxu0 %v1216_v26  ;;  %2164 = vmatmul.mubr.bf16.vlgmr.msra.gmra.mrb[8].mxu1 %v1216_v26 }
 0x28d   :  { %2868 = vmatpush3.bf16.msra.mxu0 %v3343_v24  ;;  %2890 = vmatpush3.bf16.msra.mxu1 %v3344_v25 }
 0x28e   :  { %2869 = vmatprep.subr.bf16.mxu0 %v3345_v57  ;;  %2891 = vmatprep.subr.bf16.mxu1 %v3346_v27 }
 0x291   :  { %2870 = vmatpush3.bf16.msra.mxu0 %v3347_v29  ;;  %2892 = vmatpush3.bf16.msra.mxu1 %v3348_v30 }
 0x292   :  { %2871 = vmatprep.subr.bf16.mxu0 %v3349_v32  ;;  %2893 = vmatprep.subr.bf16.mxu1 %v3350_v33 }
 0x295   :  { %2872 = vmatpush3.bf16.msra.mxu0 %v3351_v34  ;;  %2894 = vmatpush3.bf16.msra.mxu1 %v3352_v35 }
 0x296   :  { %2873 = vmatprep.subr.bf16.mxu0 %v3353_v36  ;;  %2895 = vmatprep.subr.bf16.mxu1 %v3354_v37 }
 0x299   :  { %2874 = vmatpush3.bf16.msra.mxu0 %v3355_v38  ;;  %2896 = vmatpush3.bf16.msra.mxu1 %v3356_v39 }
 0x29a   :  { %2875 = vmatprep.subr.bf16.mxu0 %v3357_v40  ;;  %2897 = vmatprep.subr.bf16.mxu1 %v3358_v13 }
 0x29d   :  { %2876 = vmatpush3.bf16.msra.mxu0 %v3359_v41  ;;  %2898 = vmatpush3.bf16.msra.mxu1 %v3360_v42 }
 0x29e   :  { %2877 = vmatprep.subr.bf16.mxu0 %v3361_v43  ;;  %2899 = vmatprep.subr.bf16.mxu1 %v3362_v44 }
 0x2a1   :  { %2878 = vmatpush3.bf16.msra.mxu0 %v3363_v45  ;;  %2900 = vmatpush3.bf16.msra.mxu1 %v3364_v15 }
 0x2a2   :  { %2879 = vmatprep.subr.bf16.mxu0 %v3365_v46  ;;  %2901 = vmatprep.subr.bf16.mxu1 %v3366_v47 }
 0x2a5   :  { %2880 = vmatpush3.bf16.msra.mxu0 %v3367_v48  ;;  %2902 = vmatpush3.bf16.msra.mxu1 %v3368_v49 }
 0x2a6   :  { %2881 = vmatprep.subr.bf16.mxu0 %v3369_v28  ;;  %2903 = vmatprep.subr.bf16.mxu1 %v3370_v50 }
 0x2a9   :  { %2882 = vmatpush3.bf16.msra.mxu0 %v3371_v51  ;;  %2904 = vmatpush3.bf16.msra.mxu1 %v3372_v53 }
 0x35f   :  { %v2083_v60 = vpop.f32.mrb[8].mxu0  ;;  %v2165_v61 = vpop.f32.mrb[8].mxu1 }
 0x360   :  { %v2915_v62 = vadd.f32 %v2083_v60, %v1351_v55  ;;  %v2917_v63 = vadd.f32 %v2165_v61, %v1359_v56  ;;  %v2085_v0 = vpop.f32.mrb[9].mxu0  ;;  %v2167_v1 = vpop.f32.mrb[9].mxu1 }
 0x361   :  { %v2916_v2 = vadd.f32 %v2085_v0, %v1355_v58  ;;  %v2918_v3 = vadd.f32 %v2167_v1, %v1363_v59  ;;  %v2087_v4 = vpop.f32.mrb[10].mxu0  ;;  %v2169_v5 = vpop.f32.mrb[10].mxu1 }
 0x362   :  { %v2172_v6 = vmax.f32 %v2915_v62, 0.0  ;;  %v2174_v7 = vmax.f32 %v2917_v63, 0.0  ;;  %v2088_v8 = vpop.f32.mrb[11].mxu0  ;;  %v2170_v14 = vpop.f32.mrb[11].mxu1 }
 0x363   :  { %v2173_v9 = vmax.f32 %v2916_v2, 0.0  ;;  %v2175_v31 = vmax.f32 %v2918_v3, 0.0 }
 0x364   :  { %v2176_v17 = vpack.c.bf16 %v2172_v6, %v2172_v6  ;;  %v2178_v19 = vpack.c.bf16 %v2174_v7, %v2174_v7 }
 0x365   :  { %v2177_v10 = vpack.c.bf16 %v2173_v9, %v2173_v9  ;;  %v2865_v16 = vpack.c.bf16 %v2173_v9, %v2172_v6  ;;  %v2179_v11 = vpack.c.bf16 %v2175_v31, %v2175_v31  ;;  %v2866_v18 = vpack.c.bf16 %v2175_v31, %v2174_v7 }
 0x367   :  { %2192 = vst [vmem:[#allocation10] sm:$0xff] %v2865_v16  ;;  %2193 = vst [vmem:[#allocation10 + $0x8] sm:$0xff] %v2866_v18  ;;  %2489 = vmatprep.mubr.bf16.mxu0 %v2177_v10  ;;  %2529 = vmatprep.mubr.bf16.mxu1 %v2179_v11 }
 0x368   :  { %2490 = vmatmul.mubr.bf16.vlgmr.msra.gmra.mrb[12].mxu0 %v2176_v17  ;;  %2530 = vmatmul.mubr.bf16.vlgmr.msra.gmra.mrb[12].mxu1 %v2178_v19 }
 0x369   :  { %3474 = shalt.err (!%p3471_p8)
}
 0x36a   :  { %s3475_s1 = scalar_lea.hbm %s3715_s10, 256 }
 0x36b   :  { %p3476_p9 = scmp.ne.s32.totalorder %s3715_s10, %s3475_s1  ;;  %p3479_p10 = scmp.lt.u32.totalorder %s3475_s1, %s3715_s10 }
 0x36d   :  { %p3481_p11 = pnand %p3479_p10, %p3476_p9 }
 0x36f   :  { %3484 = shalt.err (!%p3481_p11)
}
 0x370   :  { %2554 = dma.vmem_to_hbm [thread:$0]  %s2552_s28, 256, %s3715_s10, [#allocation4]   ;;  %v2832_v22 = vld [vmem:[%s3713_s8] ss:$0 sm:$0xff]  ;;  %v2538_v33 = vand.u32 127, %v102_v12 }
 0x372   :  { %vm2539_vm1 = vcmp.lt.s32.totalorder %v2538_v33, 4 }
 0x43b   :  { %v2883_v20 = vpop.f32.mrb[12].mxu0  ;;  %v2905_v21 = vpop.f32.mrb[12].mxu1 }
 0x43c   :  { %v2884_v52 = vpop.f32.mrb[13].mxu0  ;;  %v2906_v23 = vpop.f32.mrb[13].mxu1 }
 0x43d   :  { %v2885_v24 = vadd.f32 %v2884_v52, %v2883_v20  ;;  %v2907_v25 = vadd.f32 %v2906_v23, %v2905_v21  ;;  %v2886_v26 = vpop.f32.mrb[14].mxu0  ;;  %v2908_v57 = vpop.f32.mrb[14].mxu1 }
 0x43e   :  { %v2887_v27 = vpop.f32.mrb[15].mxu0  ;;  %v2909_v29 = vpop.f32.mrb[15].mxu1 }
 0x43f   :  { %v2492_v30 = vadd.f32 %v2885_v24, %v2832_v22 }
 0x441   :  { %v2532_v32 = vadd.f32 %v2907_v25, %v2492_v30 }
 0x443   :  { %3373 = vtanh.f32 %v2532_v32 }
 0x44d   :  { %v3374_v34 = vpop.eup %3373 }
 0x44e   :  { %v2541_v35 = vsel %vm2539_vm1, %v3374_v34, %v2532_v32 }
 0x44f   :  { %2542 = vst [vmem:[%s3714_s9] sm:$0xff] %v2541_v35 }
 0x450   :  { %3491 = dma.done.wait [#allocation4], 256  }
 0x451   :  { %3492 = vsyncadd [#allocation4], 4294967040 }
 0x452   :  { %2560 = vsyncpa [#allocation3], 1 }
 0x453   :  { %2561 = vsyncpa [#allocation6], 1 }
 0x454   :  { %2562 = vsyncpa [#allocation9], 1 }
 0x455   :  { %2563 = vsyncpa [#allocation4], 1 }

</bundles_post_ra>
